<compile_context>
chip_gen: v7x
topology: tpu7x:2x2x1
jax: 0.10.0
libtpu: 0.0.40
codegen_flags: <defaults>
</compile_context>

<pallas_src>
import functools

import jax
import jax.numpy as jnp
from jax.experimental import pallas as pl
from jax.experimental.pallas import tpu as pltpu


# ----------------------------- in-kernel helpers -----------------------------

def _layernorm(x, g, b, eps):
    # PyTorch nn.LayerNorm semantics (biased variance, eps inside rsqrt); f32 stats.
    x = x.astype(jnp.float32)
    mu = jnp.mean(x, axis=-1, keepdims=True)
    xc = x - mu
    var = jnp.mean(xc * xc, axis=-1, keepdims=True)
    return xc * jax.lax.rsqrt(var + eps) * g + b


def _gelu(x):
    # exact (erf-based) GELU, matching torch.nn.GELU / F.gelu default.
    return 0.5 * x * (1.0 + jax.lax.erf(x * 0.7071067811865476))


# --------------------------------- kernels -----------------------------------

def encoder_stack_kernel(emb_ref, bias_ref, emb_g_ref, emb_b_ref,
                         wqkv_ref, bqkv_ref, wo_ref, bo_ref, g1_ref, be1_ref,
                         w1_ref, bf1_ref, w2_ref, bf2_ref, g2_ref, be2_ref,
                         o_ref, x_state, *, num_heads):
    """grid = (batch, layer). One grid step == one layer of one sequence.
    The residual stream is resident in VMEM scratch across the layer axis."""
    l = pl.program_id(1)
    n_layers = pl.num_programs(1)

    # Layer 0: fused embedding LayerNorm initializes the resident residual stream.
    @pl.when(l == 0)
    def _():
        x_state[...] = _layernorm(emb_ref[0], emb_g_ref[...], emb_b_ref[...], eps=1e-12)

    x = x_state[...]                                   # [S, H] f32 residual stream
    S, H = x.shape
    nh = num_heads
    hd = H // nh
    x_bf = x.astype(jnp.bfloat16)
    bias = bias_ref[0]                                 # [1, S] additive key-padding bias

    # ---- fused QKV projection: one lane-dense [S,H] @ [H,3H] matmul.
    # 1/sqrt(hd) is already folded into the Wq columns at parameter-prep time.
    qkv = jnp.dot(x_bf, wqkv_ref[0],
                  preferred_element_type=jnp.float32) + bqkv_ref[0]   # [S, 3H] f32

    # ---- attention, one head at a time: only one [S,S] score matrix live.
    ctx_parts = []
    for h in range(nh):
        q_h = qkv[:, h * hd:(h + 1) * hd].astype(jnp.bfloat16)            # [S, hd]
        k_h = qkv[:, H + h * hd:H + (h + 1) * hd].astype(jnp.bfloat16)    # [S, hd]
        v_h = qkv[:, 2 * H + h * hd:2 * H + (h + 1) * hd].astype(jnp.bfloat16)
        s = jax.lax.dot_general(q_h, k_h, (((1,), (1,)), ((), ())),       # q @ k.T
                                preferred_element_type=jnp.float32)       # [S, S]
        s = s + bias
        m = jnp.max(s, axis=-1, keepdims=True)
        p = jnp.exp(s - m)
        a = p * pl.reciprocal(jnp.sum(p, axis=-1, keepdims=True), approx=True)
        ctx_parts.append(jnp.dot(a.astype(jnp.bfloat16), v_h,
                                 preferred_element_type=jnp.float32))     # [S, hd]
    ctx = jnp.concatenate(ctx_parts, axis=-1)          # [S, H] f32, head-major lanes

    # ---- output projection: single dense matmul, K = H contraction depth.
    attn_out = jnp.dot(ctx.astype(jnp.bfloat16), wo_ref[0],
                       preferred_element_type=jnp.float32) + bo_ref[0]

    # post-norm (TransformerEncoderLayer norm_first=False, layer_norm_eps=1e-5)
    x1 = _layernorm(x + attn_out, g1_ref[0], be1_ref[0], eps=1e-5)

    # ---- feed-forward ----
    h1 = _gelu(jnp.dot(x1.astype(jnp.bfloat16), w1_ref[0],
                       preferred_element_type=jnp.float32) + bf1_ref[0])
    ff = jnp.dot(h1.astype(jnp.bfloat16), w2_ref[0],
                 preferred_element_type=jnp.float32) + bf2_ref[0]
    x2 = _layernorm(x1 + ff, g2_ref[0], be2_ref[0], eps=1e-5)

    x_state[...] = x2

    @pl.when(l == n_layers - 1)
    def _():
        o_ref[0] = x2.astype(o_ref.dtype)


def mlm_kernel(x_ref, w1_ref, b1_ref, g_ref, be_ref, w2_ref, b2_ref, o_ref, h_state):
    """grid = (row_tile, vocab_tile); vocab is the inner (arbitrary) axis."""
    # fc1 + GELU + LayerNorm computed once per row tile, cached in VMEM scratch.
    @pl.when(pl.program_id(1) == 0)
    def _():
        h = _gelu(jnp.dot(x_ref[...], w1_ref[...],
                          preferred_element_type=jnp.float32) + b1_ref[...])
        h_state[...] = _layernorm(h, g_ref[...], be_ref[...], eps=1e-12).astype(jnp.bfloat16)
    o_ref[...] = (jnp.dot(h_state[...], w2_ref[...],
                          preferred_element_type=jnp.float32)
                  + b2_ref[...]).astype(o_ref.dtype)


# ------------------------------ pallas wrappers -------------------------------

def _vmem_capacity_bytes():
    try:
        return int(pltpu.get_tpu_info().vmem_capacity_bytes)
    except Exception:
        return 64 * 1024 * 1024        # conservative fallback (works on all chips)


def _vmem_limit_bytes():
    cap = _vmem_capacity_bytes()
    # ~100 MB on 128-MiB parts (v5e/v6e), ~56 MB on 64-MiB parts (v7x).
    return max(32 * 1024 * 1024, min(100 * 1024 * 1024, cap - 8 * 1024 * 1024))


def _pick_tile(n, target, quantum):
    """Largest divisor of n that is <= target and a multiple of quantum (else n)."""
    best = None
    t = quantum
    while t <= min(n, target):
        if n % t == 0:
            best = t
        t += quantum
    return best if best is not None else n


def encoder_stack_pallas(emb, bias, enc, num_heads):
    B, S, H = emb.shape
    L = enc['wqkv'].shape[0]
    FF = enc['w1'].shape[2]

    def by_batch(shape):
        return pl.BlockSpec(shape, lambda b, l: (b,) + (0,) * (len(shape) - 1))

    def by_layer(shape):
        return pl.BlockSpec(shape, lambda b, l: (l,) + (0,) * (len(shape) - 1))

    def const(shape):
        return pl.BlockSpec(shape, lambda b, l: (0,) * len(shape))

    in_specs = [
        by_batch((1, S, H)),                       # summed embeddings (bf16)
        by_batch((1, 1, S)),                       # additive key-padding bias (f32)
        const((1, H)), const((1, H)),              # embedding LayerNorm gamma/beta
        by_layer((1, H, 3 * H)), by_layer((1, 1, 3 * H)),     # fused Wqkv / bqkv
        by_layer((1, H, H)), by_layer((1, 1, H)),             # Wo, bo
        by_layer((1, 1, H)), by_layer((1, 1, H)),             # ln1 gamma/beta
        by_layer((1, H, FF)), by_layer((1, 1, FF)),           # ffn linear1
        by_layer((1, FF, H)), by_layer((1, 1, H)),            # ffn linear2
        by_layer((1, 1, H)), by_layer((1, 1, H)),             # ln2 gamma/beta
    ]
    return pl.pallas_call(
        functools.partial(encoder_stack_kernel, num_heads=num_heads),
        out_shape=jax.ShapeDtypeStruct((B, S, H), jnp.bfloat16),
        grid=(B, L),
        in_specs=in_specs,
        out_specs=pl.BlockSpec((1, S, H), lambda b, l: (b, 0, 0)),
        scratch_shapes=[pltpu.VMEM((S, H), jnp.float32)],
        compiler_params=pltpu.CompilerParams(
            dimension_semantics=("parallel", "arbitrary"),
            vmem_limit_bytes=_vmem_limit_bytes()),
    )(emb, bias, enc['emb_g'], enc['emb_b'],
      enc['wqkv'], enc['bqkv'], enc['wo'], enc['bo'], enc['g1'], enc['be1'],
      enc['w1'], enc['bf1'], enc['w2'], enc['bf2'], enc['g2'], enc['be2'])


def mlm_head_pallas(x, p, out_dtype=jnp.bfloat16):
    N, H = x.shape
    V = p['w2'].shape[1]
    cap = _vmem_capacity_bytes()
    if cap >= 96 * 1024 * 1024:        # 128-MiB parts (v5e/v6e): bigger row tiles
        tm_target, tv_target = 1024, 2048
    else:                              # 64-MiB parts (v7x): smaller tiles
        tm_target, tv_target = 512, 1024
    tm = _pick_tile(N, tm_target, 16)  # 16-row quantum: bf16 sublane packing
    tv = _pick_tile(V, tv_target, 128)
    return pl.pallas_call(
        mlm_kernel,
        out_shape=jax.ShapeDtypeStruct((N, V), out_dtype),
        grid=(N // tm, V // tv),
        in_specs=[
            pl.BlockSpec((tm, H), lambda i, j: (i, 0)),   # token rows (bf16)
            pl.BlockSpec((H, H), lambda i, j: (0, 0)),    # fc1 weight
            pl.BlockSpec((1, H), lambda i, j: (0, 0)),    # fc1 bias
            pl.BlockSpec((1, H), lambda i, j: (0, 0)),    # LN gamma
            pl.BlockSpec((1, H), lambda i, j: (0, 0)),    # LN beta
            pl.BlockSpec((H, tv), lambda i, j: (0, j)),   # fc2 weight (vocab tiled)
            pl.BlockSpec((1, tv), lambda i, j: (0, j)),   # fc2 bias (vocab tiled)
        ],
        out_specs=pl.BlockSpec((tm, tv), lambda i, j: (i, j)),
        scratch_shapes=[pltpu.VMEM((tm, H), jnp.bfloat16)],
        compiler_params=pltpu.CompilerParams(
            dimension_semantics=("parallel", "arbitrary"),
            vmem_limit_bytes=_vmem_limit_bytes()),
    )(x, p['w1'], p['b1'], p['g'], p['b'], p['w2'], p['b2'])


# ------------------------------ model forward ---------------------------------

def bert_for_mlm_forward(params, seq, mask, seg=None):
    """seq: [B, S] int32 token ids; mask: [B, S] bool (True = padding key);
    seg: optional [B, S] int32 segment ids. Returns [B, S, vocab] bf16 logits."""
    B, S = seq.shape

    # Embedding table gathers are glue (plain JAX); the embedding LayerNorm is
    # fused into the encoder kernel at layer 0. Stream embeddings in bf16.
    tok = jnp.take(params['token_emb'], seq, axis=0)            # [B, S, H]
    pos = params['pos_emb'][:S][None, :, :]                     # [1, S, H]
    seg_ids = jnp.zeros((B, S), dtype=jnp.int32) if seg is None else seg
    sgm = jnp.take(params['seg_emb'], seg_ids, axis=0)          # [B, S, H]
    emb = (tok + pos + sgm).astype(jnp.bfloat16)

    # src_key_padding_mask semantics: True -> key is ignored (additive -1e30).
    bias = jnp.where(mask, jnp.float32(-1e30), jnp.float32(0.0)).reshape(B, 1, S)

    x = encoder_stack_pallas(emb, bias, params['encoder'], params['num_heads'])  # bf16
    H = x.shape[-1]

    logits = mlm_head_pallas(x.reshape(B * S, H), params['mlm'])
    return logits.reshape(B, S, -1)


# ------------------------------ parameter init ---------------------------------

def init_params(key, *, vocab, hidden, ff, max_len, heads, layers):
    std = 0.02
    H, FF, L, nh = hidden, ff, layers, heads
    hd = H // nh
    scale = 1.0 / float(hd) ** 0.5

    def nrm(k, shape):
        return jax.random.normal(k, shape, jnp.float32) * std

    ks = jax.random.split(key, 10)
    params = {
        'token_emb': nrm(ks[0], (vocab, H)).at[0].set(0.0),     # padding_idx=0
        'pos_emb': nrm(ks[1], (max_len, H)),
        'seg_emb': nrm(ks[2], (2, H)),
        'num_heads': nh,
    }

    # Encoder weights: stacked over layers; Q/K/V fused into one [H, 3H] weight
    # with the 1/sqrt(hd) score scale folded into the Wq (and bq) columns.
    wq = nrm(ks[3], (L, H, H)) * scale
    wk = nrm(ks[4], (L, H, H))
    wv = nrm(ks[5], (L, H, H))
    wqkv = jnp.concatenate([wq, wk, wv], axis=2).astype(jnp.bfloat16)   # [L, H, 3H]
    wo = nrm(ks[6], (L, H, H))
    w1 = nrm(ks[7], (L, H, FF))
    w2 = nrm(ks[8], (L, FF, H))

    params['encoder'] = {
        'emb_g': jnp.ones((1, H), jnp.float32),
        'emb_b': jnp.zeros((1, H), jnp.float32),
        'wqkv': wqkv, 'bqkv': jnp.zeros((L, 1, 3 * H), jnp.float32),
        'wo': wo.astype(jnp.bfloat16), 'bo': jnp.zeros((L, 1, H), jnp.float32),
        'g1': jnp.ones((L, 1, H), jnp.float32), 'be1': jnp.zeros((L, 1, H), jnp.float32),
        'w1': w1.astype(jnp.bfloat16), 'bf1': jnp.zeros((L, 1, FF), jnp.float32),
        'w2': w2.astype(jnp.bfloat16), 'bf2': jnp.zeros((L, 1, H), jnp.float32),
        'g2': jnp.ones((L, 1, H), jnp.float32), 'be2': jnp.zeros((L, 1, H), jnp.float32),
    }

    mk = jax.random.split(ks[9], 2)
    params['mlm'] = {
        'w1': nrm(mk[0], (H, H)).astype(jnp.bfloat16), 'b1': jnp.zeros((1, H), jnp.float32),
        'g': jnp.ones((1, H), jnp.float32), 'b': jnp.zeros((1, H), jnp.float32),
        'w2': nrm(mk[1], (H, vocab)).astype(jnp.bfloat16), 'b2': jnp.zeros((1, vocab), jnp.float32),
    }
    return params


# ----------------------------------- main --------------------------------------

if __name__ == "__main__":
    # Small, shape-consistent config: vocab=256, hidden=128, ff=256, heads=4,
    # layers=2, max_length=16, batch=2, seq=8.
    VOCAB, HIDDEN, FF, MAXLEN, HEADS, LAYERS = 256, 128, 256, 16, 4, 2
    B, S = 2, 8

    key = jax.random.PRNGKey(0)
    pkey, skey = jax.random.split(key)
    params = init_params(pkey, vocab=VOCAB, hidden=HIDDEN, ff=FF,
                         max_len=MAXLEN, heads=HEADS, layers=LAYERS)

    seq = jax.random.randint(skey, (B, S), 1, VOCAB, dtype=jnp.int32)
    # key padding mask: True = padding. Pad the last two positions of batch 1.
    mask = jnp.zeros((B, S), dtype=bool).at[1, S - 2:].set(True)

    out = bert_for_mlm_forward(params, seq, mask, seg=None)     # [B, S, VOCAB]
    out = jax.block_until_ready(out)

    assert out.shape == (B, S, VOCAB), out.shape
    assert bool(jnp.isfinite(out.astype(jnp.float32)).all()), "non-finite values in output"
    print("KERNEL_OK")
</pallas_src>

<mosaic_0001>
module attributes {stable_mosaic.version = 11 : i64} {
  func.func @encoder_stack_kernel(%arg0: i32, %arg1: i32, %arg2: memref<1x8x128xbf16, #tpu.memory_space<vmem>>, %arg3: memref<1x1x8xf32, #tpu.memory_space<vmem>>, %arg4: memref<1x128xf32, #tpu.memory_space<vmem>>, %arg5: memref<1x128xf32, #tpu.memory_space<vmem>>, %arg6: memref<1x128x384xbf16, #tpu.memory_space<vmem>>, %arg7: memref<1x1x384xf32, #tpu.memory_space<vmem>>, %arg8: memref<1x128x128xbf16, #tpu.memory_space<vmem>>, %arg9: memref<1x1x128xf32, #tpu.memory_space<vmem>>, %arg10: memref<1x1x128xf32, #tpu.memory_space<vmem>>, %arg11: memref<1x1x128xf32, #tpu.memory_space<vmem>>, %arg12: memref<1x128x256xbf16, #tpu.memory_space<vmem>>, %arg13: memref<1x1x256xf32, #tpu.memory_space<vmem>>, %arg14: memref<1x256x128xbf16, #tpu.memory_space<vmem>>, %arg15: memref<1x1x128xf32, #tpu.memory_space<vmem>>, %arg16: memref<1x1x128xf32, #tpu.memory_space<vmem>>, %arg17: memref<1x1x128xf32, #tpu.memory_space<vmem>>, %arg18: memref<1x8x128xbf16, #tpu.memory_space<vmem>>, %arg19: memref<8x128xf32, #tpu.memory_space<vmem>>) attributes {dimension_semantics = [#tpu.dimension_semantics<parallel>, #tpu.dimension_semantics<arbitrary>], iteration_bounds = array<i64: 2, 2>, scalar_prefetch = 0 : i64, scratch_operands = 1 : i64, tpu.core_type = #tpu.core_type<tc>, window_params = [{transform_indices = @transform_0, window_bounds = array<i64: 1, 8, 128>}, {transform_indices = @transform_1, window_bounds = array<i64: 1, 1, 8>}, {pipeline_mode = #tpu.pipeline_mode<synchronous>, transform_indices = @transform_2, window_bounds = array<i64: 1, 128>}, {pipeline_mode = #tpu.pipeline_mode<synchronous>, transform_indices = @transform_3, window_bounds = array<i64: 1, 128>}, {transform_indices = @transform_4, window_bounds = array<i64: 1, 128, 384>}, {transform_indices = @transform_5, window_bounds = array<i64: 1, 1, 384>}, {transform_indices = @transform_6, window_bounds = array<i64: 1, 128, 128>}, {transform_indices = @transform_7, window_bounds = array<i64: 1, 1, 128>}, {transform_indices = @transform_8, window_bounds = array<i64: 1, 1, 128>}, {transform_indices = @transform_9, window_bounds = array<i64: 1, 1, 128>}, {transform_indices = @transform_10, window_bounds = array<i64: 1, 128, 256>}, {transform_indices = @transform_11, window_bounds = array<i64: 1, 1, 256>}, {transform_indices = @transform_12, window_bounds = array<i64: 1, 256, 128>}, {transform_indices = @transform_13, window_bounds = array<i64: 1, 1, 128>}, {transform_indices = @transform_14, window_bounds = array<i64: 1, 1, 128>}, {transform_indices = @transform_15, window_bounds = array<i64: 1, 1, 128>}, {transform_indices = @transform_16, window_bounds = array<i64: 1, 8, 128>}]} {
    %c0_i32 = arith.constant 0 : i32
    %0 = arith.cmpi eq, %arg1, %c0_i32 : i32
    %1 = arith.extui %0 : i1 to i32
    %c0_i32_0 = arith.constant 0 : i32
    %2 = arith.cmpi ne, %1, %c0_i32_0 : i32
    scf.if %2 {
      %c0_76 = arith.constant 0 : index
      %c0_77 = arith.constant 0 : index
      %c0_78 = arith.constant 0 : index
      %185 = vector.load %arg2[%c0_76, %c0_77, %c0_78] : memref<1x8x128xbf16, #tpu.memory_space<vmem>>, vector<1x8x128xbf16>
      %186 = vector.shape_cast %185 : vector<1x8x128xbf16> to vector<8x128xbf16>
      %c0_79 = arith.constant 0 : index
      %c0_80 = arith.constant 0 : index
      %187 = vector.load %arg4[%c0_79, %c0_80] : memref<1x128xf32, #tpu.memory_space<vmem>>, vector<1x128xf32>
      %c0_81 = arith.constant 0 : index
      %c0_82 = arith.constant 0 : index
      %188 = vector.load %arg5[%c0_81, %c0_82] : memref<1x128xf32, #tpu.memory_space<vmem>>, vector<1x128xf32>
      %189 = arith.extf %186 : vector<8x128xbf16> to vector<8x128xf32>
      %cst_83 = arith.constant dense<0.000000e+00> : vector<8xf32>
      %190 = vector.multi_reduction <add>, %189, %cst_83 [1] : vector<8x128xf32> to vector<8xf32>
      %191 = vector.shape_cast %190 : vector<8xf32> to vector<8x1xf32>
      %cst_84 = arith.constant 1.280000e+02 : f32
      %192 = vector.broadcast %cst_84 : f32 to vector<8x1xf32>
      %193 = arith.divf %191, %192 : vector<8x1xf32>
      %194 = vector.broadcast %193 : vector<8x1xf32> to vector<8x128xf32>
      %195 = arith.subf %189, %194 : vector<8x128xf32>
      %196 = arith.mulf %195, %195 : vector<8x128xf32>
      %cst_85 = arith.constant dense<0.000000e+00> : vector<8xf32>
      %197 = vector.multi_reduction <add>, %196, %cst_85 [1] : vector<8x128xf32> to vector<8xf32>
      %198 = vector.shape_cast %197 : vector<8xf32> to vector<8x1xf32>
      %cst_86 = arith.constant 1.280000e+02 : f32
      %199 = vector.broadcast %cst_86 : f32 to vector<8x1xf32>
      %200 = arith.divf %198, %199 : vector<8x1xf32>
      %cst_87 = arith.constant 9.99999996E-13 : f32
      %201 = vector.broadcast %cst_87 : f32 to vector<8x1xf32>
      %202 = arith.addf %200, %201 : vector<8x1xf32>
      %203 = math.rsqrt %202 : vector<8x1xf32>
      %204 = vector.broadcast %203 : vector<8x1xf32> to vector<8x128xf32>
      %205 = arith.mulf %195, %204 : vector<8x128xf32>
      %206 = vector.broadcast %187 : vector<1x128xf32> to vector<8x128xf32>
      %207 = arith.mulf %205, %206 : vector<8x128xf32>
      %208 = vector.broadcast %188 : vector<1x128xf32> to vector<8x128xf32>
      %209 = arith.addf %207, %208 : vector<8x128xf32>
      %c0_88 = arith.constant 0 : index
      %c0_89 = arith.constant 0 : index
      %210 = vector.load %arg19[%c0_88, %c0_89] : memref<8x128xf32, #tpu.memory_space<vmem>>, vector<8x128xf32>
      tpu.vector_store %arg19[%c0_88, %c0_89], %209 {strides = array<i32>} : memref<8x128xf32, #tpu.memory_space<vmem>>, vector<8x128xf32>,
    } else {
    }
    %c0 = arith.constant 0 : index
    %c0_1 = arith.constant 0 : index
    %3 = vector.load %arg19[%c0, %c0_1] : memref<8x128xf32, #tpu.memory_space<vmem>>, vector<8x128xf32>
    %4 = arith.truncf %3 : vector<8x128xf32> to vector<8x128xbf16>
    %c0_2 = arith.constant 0 : index
    %c0_3 = arith.constant 0 : index
    %c0_4 = arith.constant 0 : index
    %5 = vector.load %arg3[%c0_2, %c0_3, %c0_4] : memref<1x1x8xf32, #tpu.memory_space<vmem>>, vector<1x1x8xf32>
    %6 = vector.shape_cast %5 : vector<1x1x8xf32> to vector<1x8xf32>
    %c0_5 = arith.constant 0 : index
    %c0_6 = arith.constant 0 : index
    %c0_7 = arith.constant 0 : index
    %7 = vector.load %arg6[%c0_5, %c0_6, %c0_7] : memref<1x128x384xbf16, #tpu.memory_space<vmem>>, vector<1x128x384xbf16>
    %8 = vector.shape_cast %7 : vector<1x128x384xbf16> to vector<128x384xbf16>
    %cst = arith.constant dense<0.000000e+00> : vector<8x384xf32>
    %9 = tpu.matmul %4, %8, %cst {dimension_numbers = #tpu.dot_dimension_numbers<[1], [0], [0], [1], [0, 0, 1, 1], [], []>} : vector<8x128xbf16>, vector<128x384xbf16>, vector<8x384xf32> -> vector<8x384xf32>
    %c0_8 = arith.constant 0 : index
    %c0_9 = arith.constant 0 : index
    %c0_10 = arith.constant 0 : index
    %10 = vector.load %arg7[%c0_8, %c0_9, %c0_10] : memref<1x1x384xf32, #tpu.memory_space<vmem>>, vector<1x1x384xf32>
    %11 = vector.shape_cast %10 : vector<1x1x384xf32> to vector<1x384xf32>
    %12 = vector.broadcast %11 : vector<1x384xf32> to vector<8x384xf32>
    %13 = arith.addf %9, %12 : vector<8x384xf32>
    %14 = vector.extract_strided_slice %13 {offsets = [0, 0], sizes = [8, 32], strides = [1, 1]} : vector<8x384xf32> to vector<8x32xf32>
    %15 = arith.truncf %14 : vector<8x32xf32> to vector<8x32xbf16>
    %16 = vector.extract_strided_slice %13 {offsets = [0, 128], sizes = [8, 32], strides = [1, 1]} : vector<8x384xf32> to vector<8x32xf32>
    %17 = arith.truncf %16 : vector<8x32xf32> to vector<8x32xbf16>
    %18 = vector.extract_strided_slice %13 {offsets = [0, 256], sizes = [8, 32], strides = [1, 1]} : vector<8x384xf32> to vector<8x32xf32>
    %19 = arith.truncf %18 : vector<8x32xf32> to vector<8x32xbf16>
    %cst_11 = arith.constant dense<0.000000e+00> : vector<8x8xf32>
    %20 = tpu.matmul %15, %17, %cst_11 {dimension_numbers = #tpu.dot_dimension_numbers<[1], [1], [0], [0], [0, 0, 1, 0], [], []>} : vector<8x32xbf16>, vector<8x32xbf16>, vector<8x8xf32> -> vector<8x8xf32>
    %21 = vector.broadcast %6 : vector<1x8xf32> to vector<8x8xf32>
    %22 = arith.addf %20, %21 : vector<8x8xf32>
    %cst_12 = arith.constant dense<0xFF800000> : vector<8xf32>
    %23 = vector.multi_reduction <maximumf>, %22, %cst_12 [1] : vector<8x8xf32> to vector<8xf32>
    %24 = vector.shape_cast %23 : vector<8xf32> to vector<8x1xf32>
    %25 = vector.broadcast %24 : vector<8x1xf32> to vector<8x8xf32>
    %26 = arith.subf %22, %25 : vector<8x8xf32>
    %27 = math.exp %26 : vector<8x8xf32>
    %cst_13 = arith.constant dense<0.000000e+00> : vector<8xf32>
    %28 = vector.multi_reduction <add>, %27, %cst_13 [1] : vector<8x8xf32> to vector<8xf32>
    %29 = vector.shape_cast %28 : vector<8xf32> to vector<8x1xf32>
    %30 = tpu.reciprocal %29 {approx = true} : vector<8x1xf32> -> vector<8x1xf32>
    %31 = vector.broadcast %30 : vector<8x1xf32> to vector<8x8xf32>
    %32 = arith.mulf %27, %31 : vector<8x8xf32>
    %33 = arith.truncf %32 : vector<8x8xf32> to vector<8x8xbf16>
    %cst_14 = arith.constant dense<0.000000e+00> : vector<8x32xf32>
    %34 = tpu.matmul %33, %19, %cst_14 {dimension_numbers = #tpu.dot_dimension_numbers<[1], [0], [0], [1], [0, 0, 1, 1], [], []>} : vector<8x8xbf16>, vector<8x32xbf16>, vector<8x32xf32> -> vector<8x32xf32>
    %35 = vector.extract_strided_slice %13 {offsets = [0, 32], sizes = [8, 32], strides = [1, 1]} : vector<8x384xf32> to vector<8x32xf32>
    %36 = arith.truncf %35 : vector<8x32xf32> to vector<8x32xbf16>
    %37 = vector.extract_strided_slice %13 {offsets = [0, 160], sizes = [8, 32], strides = [1, 1]} : vector<8x384xf32> to vector<8x32xf32>
    %38 = arith.truncf %37 : vector<8x32xf32> to vector<8x32xbf16>
    %39 = vector.extract_strided_slice %13 {offsets = [0, 288], sizes = [8, 32], strides = [1, 1]} : vector<8x384xf32> to vector<8x32xf32>
    %40 = arith.truncf %39 : vector<8x32xf32> to vector<8x32xbf16>
    %cst_15 = arith.constant dense<0.000000e+00> : vector<8x8xf32>
    %41 = tpu.matmul %36, %38, %cst_15 {dimension_numbers = #tpu.dot_dimension_numbers<[1], [1], [0], [0], [0, 0, 1, 0], [], []>} : vector<8x32xbf16>, vector<8x32xbf16>, vector<8x8xf32> -> vector<8x8xf32>
    %42 = vector.broadcast %6 : vector<1x8xf32> to vector<8x8xf32>
    %43 = arith.addf %41, %42 : vector<8x8xf32>
    %cst_16 = arith.constant dense<0xFF800000> : vector<8xf32>
    %44 = vector.multi_reduction <maximumf>, %43, %cst_16 [1] : vector<8x8xf32> to vector<8xf32>
    %45 = vector.shape_cast %44 : vector<8xf32> to vector<8x1xf32>
    %46 = vector.broadcast %45 : vector<8x1xf32> to vector<8x8xf32>
    %47 = arith.subf %43, %46 : vector<8x8xf32>
    %48 = math.exp %47 : vector<8x8xf32>
    %cst_17 = arith.constant dense<0.000000e+00> : vector<8xf32>
    %49 = vector.multi_reduction <add>, %48, %cst_17 [1] : vector<8x8xf32> to vector<8xf32>
    %50 = vector.shape_cast %49 : vector<8xf32> to vector<8x1xf32>
    %51 = tpu.reciprocal %50 {approx = true} : vector<8x1xf32> -> vector<8x1xf32>
    %52 = vector.broadcast %51 : vector<8x1xf32> to vector<8x8xf32>
    %53 = arith.mulf %48, %52 : vector<8x8xf32>
    %54 = arith.truncf %53 : vector<8x8xf32> to vector<8x8xbf16>
    %cst_18 = arith.constant dense<0.000000e+00> : vector<8x32xf32>
    %55 = tpu.matmul %54, %40, %cst_18 {dimension_numbers = #tpu.dot_dimension_numbers<[1], [0], [0], [1], [0, 0, 1, 1], [], []>} : vector<8x8xbf16>, vector<8x32xbf16>, vector<8x32xf32> -> vector<8x32xf32>
    %56 = vector.extract_strided_slice %13 {offsets = [0, 64], sizes = [8, 32], strides = [1, 1]} : vector<8x384xf32> to vector<8x32xf32>
    %57 = arith.truncf %56 : vector<8x32xf32> to vector<8x32xbf16>
    %58 = vector.extract_strided_slice %13 {offsets = [0, 192], sizes = [8, 32], strides = [1, 1]} : vector<8x384xf32> to vector<8x32xf32>
    %59 = arith.truncf %58 : vector<8x32xf32> to vector<8x32xbf16>
    %60 = vector.extract_strided_slice %13 {offsets = [0, 320], sizes = [8, 32], strides = [1, 1]} : vector<8x384xf32> to vector<8x32xf32>
    %61 = arith.truncf %60 : vector<8x32xf32> to vector<8x32xbf16>
    %cst_19 = arith.constant dense<0.000000e+00> : vector<8x8xf32>
    %62 = tpu.matmul %57, %59, %cst_19 {dimension_numbers = #tpu.dot_dimension_numbers<[1], [1], [0], [0], [0, 0, 1, 0], [], []>} : vector<8x32xbf16>, vector<8x32xbf16>, vector<8x8xf32> -> vector<8x8xf32>
    %63 = vector.broadcast %6 : vector<1x8xf32> to vector<8x8xf32>
    %64 = arith.addf %62, %63 : vector<8x8xf32>
    %cst_20 = arith.constant dense<0xFF800000> : vector<8xf32>
    %65 = vector.multi_reduction <maximumf>, %64, %cst_20 [1] : vector<8x8xf32> to vector<8xf32>
    %66 = vector.shape_cast %65 : vector<8xf32> to vector<8x1xf32>
    %67 = vector.broadcast %66 : vector<8x1xf32> to vector<8x8xf32>
    %68 = arith.subf %64, %67 : vector<8x8xf32>
    %69 = math.exp %68 : vector<8x8xf32>
    %cst_21 = arith.constant dense<0.000000e+00> : vector<8xf32>
    %70 = vector.multi_reduction <add>, %69, %cst_21 [1] : vector<8x8xf32> to vector<8xf32>
    %71 = vector.shape_cast %70 : vector<8xf32> to vector<8x1xf32>
    %72 = tpu.reciprocal %71 {approx = true} : vector<8x1xf32> -> vector<8x1xf32>
    %73 = vector.broadcast %72 : vector<8x1xf32> to vector<8x8xf32>
    %74 = arith.mulf %69, %73 : vector<8x8xf32>
    %75 = arith.truncf %74 : vector<8x8xf32> to vector<8x8xbf16>
    %cst_22 = arith.constant dense<0.000000e+00> : vector<8x32xf32>
    %76 = tpu.matmul %75, %61, %cst_22 {dimension_numbers = #tpu.dot_dimension_numbers<[1], [0], [0], [1], [0, 0, 1, 1], [], []>} : vector<8x8xbf16>, vector<8x32xbf16>, vector<8x32xf32> -> vector<8x32xf32>
    %77 = vector.extract_strided_slice %13 {offsets = [0, 96], sizes = [8, 32], strides = [1, 1]} : vector<8x384xf32> to vector<8x32xf32>
    %78 = arith.truncf %77 : vector<8x32xf32> to vector<8x32xbf16>
    %79 = vector.extract_strided_slice %13 {offsets = [0, 224], sizes = [8, 32], strides = [1, 1]} : vector<8x384xf32> to vector<8x32xf32>
    %80 = arith.truncf %79 : vector<8x32xf32> to vector<8x32xbf16>
    %81 = vector.extract_strided_slice %13 {offsets = [0, 352], sizes = [8, 32], strides = [1, 1]} : vector<8x384xf32> to vector<8x32xf32>
    %82 = arith.truncf %81 : vector<8x32xf32> to vector<8x32xbf16>
    %cst_23 = arith.constant dense<0.000000e+00> : vector<8x8xf32>
    %83 = tpu.matmul %78, %80, %cst_23 {dimension_numbers = #tpu.dot_dimension_numbers<[1], [1], [0], [0], [0, 0, 1, 0], [], []>} : vector<8x32xbf16>, vector<8x32xbf16>, vector<8x8xf32> -> vector<8x8xf32>
    %84 = vector.broadcast %6 : vector<1x8xf32> to vector<8x8xf32>
    %85 = arith.addf %83, %84 : vector<8x8xf32>
    %cst_24 = arith.constant dense<0xFF800000> : vector<8xf32>
    %86 = vector.multi_reduction <maximumf>, %85, %cst_24 [1] : vector<8x8xf32> to vector<8xf32>
    %87 = vector.shape_cast %86 : vector<8xf32> to vector<8x1xf32>
    %88 = vector.broadcast %87 : vector<8x1xf32> to vector<8x8xf32>
    %89 = arith.subf %85, %88 : vector<8x8xf32>
    %90 = math.exp %89 : vector<8x8xf32>
    %cst_25 = arith.constant dense<0.000000e+00> : vector<8xf32>
    %91 = vector.multi_reduction <add>, %90, %cst_25 [1] : vector<8x8xf32> to vector<8xf32>
    %92 = vector.shape_cast %91 : vector<8xf32> to vector<8x1xf32>
    %93 = tpu.reciprocal %92 {approx = true} : vector<8x1xf32> -> vector<8x1xf32>
    %94 = vector.broadcast %93 : vector<8x1xf32> to vector<8x8xf32>
    %95 = arith.mulf %90, %94 : vector<8x8xf32>
    %96 = arith.truncf %95 : vector<8x8xf32> to vector<8x8xbf16>
    %cst_26 = arith.constant dense<0.000000e+00> : vector<8x32xf32>
    %97 = tpu.matmul %96, %82, %cst_26 {dimension_numbers = #tpu.dot_dimension_numbers<[1], [0], [0], [1], [0, 0, 1, 1], [], []>} : vector<8x8xbf16>, vector<8x32xbf16>, vector<8x32xf32> -> vector<8x32xf32>
    %98 = tpu.concatenate %34, %55, %76, %97 in 1 : vector<8x32xf32>, vector<8x32xf32>, vector<8x32xf32>, vector<8x32xf32> -> vector<8x128xf32>
    %99 = arith.truncf %98 : vector<8x128xf32> to vector<8x128xbf16>
    %c0_27 = arith.constant 0 : index
    %c0_28 = arith.constant 0 : index
    %c0_29 = arith.constant 0 : index
    %100 = vector.load %arg8[%c0_27, %c0_28, %c0_29] : memref<1x128x128xbf16, #tpu.memory_space<vmem>>, vector<1x128x128xbf16>
    %101 = vector.shape_cast %100 : vector<1x128x128xbf16> to vector<128x128xbf16>
    %cst_30 = arith.constant dense<0.000000e+00> : vector<8x128xf32>
    %102 = tpu.matmul %99, %101, %cst_30 {dimension_numbers = #tpu.dot_dimension_numbers<[1], [0], [0], [1], [0, 0, 1, 1], [], []>} : vector<8x128xbf16>, vector<128x128xbf16>, vector<8x128xf32> -> vector<8x128xf32>
    %c0_31 = arith.constant 0 : index
    %c0_32 = arith.constant 0 : index
    %c0_33 = arith.constant 0 : index
    %103 = vector.load %arg9[%c0_31, %c0_32, %c0_33] : memref<1x1x128xf32, #tpu.memory_space<vmem>>, vector<1x1x128xf32>
    %104 = vector.shape_cast %103 : vector<1x1x128xf32> to vector<1x128xf32>
    %105 = vector.broadcast %104 : vector<1x128xf32> to vector<8x128xf32>
    %106 = arith.addf %102, %105 : vector<8x128xf32>
    %107 = arith.addf %3, %106 : vector<8x128xf32>
    %c0_34 = arith.constant 0 : index
    %c0_35 = arith.constant 0 : index
    %c0_36 = arith.constant 0 : index
    %108 = vector.load %arg10[%c0_34, %c0_35, %c0_36] : memref<1x1x128xf32, #tpu.memory_space<vmem>>, vector<1x1x128xf32>
    %109 = vector.shape_cast %108 : vector<1x1x128xf32> to vector<1x128xf32>
    %c0_37 = arith.constant 0 : index
    %c0_38 = arith.constant 0 : index
    %c0_39 = arith.constant 0 : index
    %110 = vector.load %arg11[%c0_37, %c0_38, %c0_39] : memref<1x1x128xf32, #tpu.memory_space<vmem>>, vector<1x1x128xf32>
    %111 = vector.shape_cast %110 : vector<1x1x128xf32> to vector<1x128xf32>
    %cst_40 = arith.constant dense<0.000000e+00> : vector<8xf32>
    %112 = vector.multi_reduction <add>, %107, %cst_40 [1] : vector<8x128xf32> to vector<8xf32>
    %113 = vector.shape_cast %112 : vector<8xf32> to vector<8x1xf32>
    %cst_41 = arith.constant 1.280000e+02 : f32
    %114 = vector.broadcast %cst_41 : f32 to vector<8x1xf32>
    %115 = arith.divf %113, %114 : vector<8x1xf32>
    %116 = vector.broadcast %115 : vector<8x1xf32> to vector<8x128xf32>
    %117 = arith.subf %107, %116 : vector<8x128xf32>
    %118 = arith.mulf %117, %117 : vector<8x128xf32>
    %cst_42 = arith.constant dense<0.000000e+00> : vector<8xf32>
    %119 = vector.multi_reduction <add>, %118, %cst_42 [1] : vector<8x128xf32> to vector<8xf32>
    %120 = vector.shape_cast %119 : vector<8xf32> to vector<8x1xf32>
    %cst_43 = arith.constant 1.280000e+02 : f32
    %121 = vector.broadcast %cst_43 : f32 to vector<8x1xf32>
    %122 = arith.divf %120, %121 : vector<8x1xf32>
    %cst_44 = arith.constant 9.99999974E-6 : f32
    %123 = vector.broadcast %cst_44 : f32 to vector<8x1xf32>
    %124 = arith.addf %122, %123 : vector<8x1xf32>
    %125 = math.rsqrt %124 : vector<8x1xf32>
    %126 = vector.broadcast %125 : vector<8x1xf32> to vector<8x128xf32>
    %127 = arith.mulf %117, %126 : vector<8x128xf32>
    %128 = vector.broadcast %109 : vector<1x128xf32> to vector<8x128xf32>
    %129 = arith.mulf %127, %128 : vector<8x128xf32>
    %130 = vector.broadcast %111 : vector<1x128xf32> to vector<8x128xf32>
    %131 = arith.addf %129, %130 : vector<8x128xf32>
    %132 = arith.truncf %131 : vector<8x128xf32> to vector<8x128xbf16>
    %c0_45 = arith.constant 0 : index
    %c0_46 = arith.constant 0 : index
    %c0_47 = arith.constant 0 : index
    %133 = vector.load %arg12[%c0_45, %c0_46, %c0_47] : memref<1x128x256xbf16, #tpu.memory_space<vmem>>, vector<1x128x256xbf16>
    %134 = vector.shape_cast %133 : vector<1x128x256xbf16> to vector<128x256xbf16>
    %cst_48 = arith.constant dense<0.000000e+00> : vector<8x256xf32>
    %135 = tpu.matmul %132, %134, %cst_48 {dimension_numbers = #tpu.dot_dimension_numbers<[1], [0], [0], [1], [0, 0, 1, 1], [], []>} : vector<8x128xbf16>, vector<128x256xbf16>, vector<8x256xf32> -> vector<8x256xf32>
    %c0_49 = arith.constant 0 : index
    %c0_50 = arith.constant 0 : index
    %c0_51 = arith.constant 0 : index
    %136 = vector.load %arg13[%c0_49, %c0_50, %c0_51] : memref<1x1x256xf32, #tpu.memory_space<vmem>>, vector<1x1x256xf32>
    %137 = vector.shape_cast %136 : vector<1x1x256xf32> to vector<1x256xf32>
    %138 = vector.broadcast %137 : vector<1x256xf32> to vector<8x256xf32>
    %139 = arith.addf %135, %138 : vector<8x256xf32>
    %cst_52 = arith.constant 5.000000e-01 : f32
    %140 = vector.broadcast %cst_52 : f32 to vector<8x256xf32>
    %141 = arith.mulf %140, %139 : vector<8x256xf32>
    %cst_53 = arith.constant 0.707106769 : f32
    %142 = vector.broadcast %cst_53 : f32 to vector<8x256xf32>
    %143 = arith.mulf %139, %142 : vector<8x256xf32>
    %144 = math.erf %143 : vector<8x256xf32>
    %cst_54 = arith.constant 1.000000e+00 : f32
    %145 = vector.broadcast %cst_54 : f32 to vector<8x256xf32>
    %146 = arith.addf %145, %144 : vector<8x256xf32>
    %147 = arith.mulf %141, %146 : vector<8x256xf32>
    %148 = arith.truncf %147 : vector<8x256xf32> to vector<8x256xbf16>
    %c0_55 = arith.constant 0 : index
    %c0_56 = arith.constant 0 : index
    %c0_57 = arith.constant 0 : index
    %149 = vector.load %arg14[%c0_55, %c0_56, %c0_57] : memref<1x256x128xbf16, #tpu.memory_space<vmem>>, vector<1x256x128xbf16>
    %150 = vector.shape_cast %149 : vector<1x256x128xbf16> to vector<256x128xbf16>
    %cst_58 = arith.constant dense<0.000000e+00> : vector<8x128xf32>
    %151 = tpu.matmul %148, %150, %cst_58 {dimension_numbers = #tpu.dot_dimension_numbers<[1], [0], [0], [1], [0, 0, 1, 1], [], []>} : vector<8x256xbf16>, vector<256x128xbf16>, vector<8x128xf32> -> vector<8x128xf32>
    %c0_59 = arith.constant 0 : index
    %c0_60 = arith.constant 0 : index
    %c0_61 = arith.constant 0 : index
    %152 = vector.load %arg15[%c0_59, %c0_60, %c0_61] : memref<1x1x128xf32, #tpu.memory_space<vmem>>, vector<1x1x128xf32>
    %153 = vector.shape_cast %152 : vector<1x1x128xf32> to vector<1x128xf32>
    %154 = vector.broadcast %153 : vector<1x128xf32> to vector<8x128xf32>
    %155 = arith.addf %151, %154 : vector<8x128xf32>
    %156 = arith.addf %131, %155 : vector<8x128xf32>
    %c0_62 = arith.constant 0 : index
    %c0_63 = arith.constant 0 : index
    %c0_64 = arith.constant 0 : index
    %157 = vector.load %arg16[%c0_62, %c0_63, %c0_64] : memref<1x1x128xf32, #tpu.memory_space<vmem>>, vector<1x1x128xf32>
    %158 = vector.shape_cast %157 : vector<1x1x128xf32> to vector<1x128xf32>
    %c0_65 = arith.constant 0 : index
    %c0_66 = arith.constant 0 : index
    %c0_67 = arith.constant 0 : index
    %159 = vector.load %arg17[%c0_65, %c0_66, %c0_67] : memref<1x1x128xf32, #tpu.memory_space<vmem>>, vector<1x1x128xf32>
    %160 = vector.shape_cast %159 : vector<1x1x128xf32> to vector<1x128xf32>
    %cst_68 = arith.constant dense<0.000000e+00> : vector<8xf32>
    %161 = vector.multi_reduction <add>, %156, %cst_68 [1] : vector<8x128xf32> to vector<8xf32>
    %162 = vector.shape_cast %161 : vector<8xf32> to vector<8x1xf32>
    %cst_69 = arith.constant 1.280000e+02 : f32
    %163 = vector.broadcast %cst_69 : f32 to vector<8x1xf32>
    %164 = arith.divf %162, %163 : vector<8x1xf32>
    %165 = vector.broadcast %164 : vector<8x1xf32> to vector<8x128xf32>
    %166 = arith.subf %156, %165 : vector<8x128xf32>
    %167 = arith.mulf %166, %166 : vector<8x128xf32>
    %cst_70 = arith.constant dense<0.000000e+00> : vector<8xf32>
    %168 = vector.multi_reduction <add>, %167, %cst_70 [1] : vector<8x128xf32> to vector<8xf32>
    %169 = vector.shape_cast %168 : vector<8xf32> to vector<8x1xf32>
    %cst_71 = arith.constant 1.280000e+02 : f32
    %170 = vector.broadcast %cst_71 : f32 to vector<8x1xf32>
    %171 = arith.divf %169, %170 : vector<8x1xf32>
    %cst_72 = arith.constant 9.99999974E-6 : f32
    %172 = vector.broadcast %cst_72 : f32 to vector<8x1xf32>
    %173 = arith.addf %171, %172 : vector<8x1xf32>
    %174 = math.rsqrt %173 : vector<8x1xf32>
    %175 = vector.broadcast %174 : vector<8x1xf32> to vector<8x128xf32>
    %176 = arith.mulf %166, %175 : vector<8x128xf32>
    %177 = vector.broadcast %158 : vector<1x128xf32> to vector<8x128xf32>
    %178 = arith.mulf %176, %177 : vector<8x128xf32>
    %179 = vector.broadcast %160 : vector<1x128xf32> to vector<8x128xf32>
    %180 = arith.addf %178, %179 : vector<8x128xf32>
    %c0_73 = arith.constant 0 : index
    %c0_74 = arith.constant 0 : index
    %181 = vector.load %arg19[%c0_73, %c0_74] : memref<8x128xf32, #tpu.memory_space<vmem>>, vector<8x128xf32>
    tpu.vector_store %arg19[%c0_73, %c0_74], %180 {strides = array<i32>} : memref<8x128xf32, #tpu.memory_space<vmem>>, vector<8x128xf32>,
    %c1_i32 = arith.constant 1 : i32
    %182 = arith.cmpi eq, %arg1, %c1_i32 : i32
    %183 = arith.extui %182 : i1 to i32
    %c0_i32_75 = arith.constant 0 : i32
    %184 = arith.cmpi ne, %183, %c0_i32_75 : i32
    scf.if %184 {
      %185 = arith.truncf %180 : vector<8x128xf32> to vector<8x128xbf16>
      %c0_76 = arith.constant 0 : index
      %c0_77 = arith.constant 0 : index
      %c0_78 = arith.constant 0 : index
      %186 = vector.load %arg18[%c0_76, %c0_77, %c0_78] : memref<1x8x128xbf16, #tpu.memory_space<vmem>>, vector<1x8x128xbf16>
      %187 = vector.shape_cast %186 : vector<1x8x128xbf16> to vector<8x128xbf16>
      %188 = vector.shape_cast %185 : vector<8x128xbf16> to vector<1x8x128xbf16>
      tpu.vector_store %arg18[%c0_76, %c0_77, %c0_78], %188 {strides = array<i32>} : memref<1x8x128xbf16, #tpu.memory_space<vmem>>, vector<1x8x128xbf16>,
    } else {
    }
    return
  }
  func.func @transform_0(%arg0: i32, %arg1: i32) -> (i32, i32, i32) {
    %c0_i32 = arith.constant 0 : i32
    %c0_i32_0 = arith.constant 0 : i32
    %c0_i32_1 = arith.constant 0 : i32
    return %arg0, %c0_i32, %c0_i32_0 : i32, i32, i32
  }
  func.func @transform_1(%arg0: i32, %arg1: i32) -> (i32, i32, i32) {
    %c0_i32 = arith.constant 0 : i32
    %c0_i32_0 = arith.constant 0 : i32
    %c0_i32_1 = arith.constant 0 : i32
    return %arg0, %c0_i32, %c0_i32_0 : i32, i32, i32
  }
  func.func @transform_2(%arg0: i32, %arg1: i32) -> (i32, i32) {
    %c0_i32 = arith.constant 0 : i32
    %c0_i32_0 = arith.constant 0 : i32
    %c0_i32_1 = arith.constant 0 : i32
    return %c0_i32, %c0_i32_0 : i32, i32
  }
  func.func @transform_3(%arg0: i32, %arg1: i32) -> (i32, i32) {
    %c0_i32 = arith.constant 0 : i32
    %c0_i32_0 = arith.constant 0 : i32
    %c0_i32_1 = arith.constant 0 : i32
    return %c0_i32, %c0_i32_0 : i32, i32
  }
  func.func @transform_4(%arg0: i32, %arg1: i32) -> (i32, i32, i32) {
    %c0_i32 = arith.constant 0 : i32
    %c0_i32_0 = arith.constant 0 : i32
    %c0_i32_1 = arith.constant 0 : i32
    return %arg1, %c0_i32, %c0_i32_0 : i32, i32, i32
  }
  func.func @transform_5(%arg0: i32, %arg1: i32) -> (i32, i32, i32) {
    %c0_i32 = arith.constant 0 : i32
    %c0_i32_0 = arith.constant 0 : i32
    %c0_i32_1 = arith.constant 0 : i32
    return %arg1, %c0_i32, %c0_i32_0 : i32, i32, i32
  }
  func.func @transform_6(%arg0: i32, %arg1: i32) -> (i32, i32, i32) {
    %c0_i32 = arith.constant 0 : i32
    %c0_i32_0 = arith.constant 0 : i32
    %c0_i32_1 = arith.constant 0 : i32
    return %arg1, %c0_i32, %c0_i32_0 : i32, i32, i32
  }
  func.func @transform_7(%arg0: i32, %arg1: i32) -> (i32, i32, i32) {
    %c0_i32 = arith.constant 0 : i32
    %c0_i32_0 = arith.constant 0 : i32
    %c0_i32_1 = arith.constant 0 : i32
    return %arg1, %c0_i32, %c0_i32_0 : i32, i32, i32
  }
  func.func @transform_8(%arg0: i32, %arg1: i32) -> (i32, i32, i32) {
    %c0_i32 = arith.constant 0 : i32
    %c0_i32_0 = arith.constant 0 : i32
    %c0_i32_1 = arith.constant 0 : i32
    return %arg1, %c0_i32, %c0_i32_0 : i32, i32, i32
  }
  func.func @transform_9(%arg0: i32, %arg1: i32) -> (i32, i32, i32) {
    %c0_i32 = arith.constant 0 : i32
    %c0_i32_0 = arith.constant 0 : i32
    %c0_i32_1 = arith.constant 0 : i32
    return %arg1, %c0_i32, %c0_i32_0 : i32, i32, i32
  }
  func.func @transform_10(%arg0: i32, %arg1: i32) -> (i32, i32, i32) {
    %c0_i32 = arith.constant 0 : i32
    %c0_i32_0 = arith.constant 0 : i32
    %c0_i32_1 = arith.constant 0 : i32
    return %arg1, %c0_i32, %c0_i32_0 : i32, i32, i32
  }
  func.func @transform_11(%arg0: i32, %arg1: i32) -> (i32, i32, i32) {
    %c0_i32 = arith.constant 0 : i32
    %c0_i32_0 = arith.constant 0 : i32
    %c0_i32_1 = arith.constant 0 : i32
    return %arg1, %c0_i32, %c0_i32_0 : i32, i32, i32
  }
  func.func @transform_12(%arg0: i32, %arg1: i32) -> (i32, i32, i32) {
    %c0_i32 = arith.constant 0 : i32
    %c0_i32_0 = arith.constant 0 : i32
    %c0_i32_1 = arith.constant 0 : i32
    return %arg1, %c0_i32, %c0_i32_0 : i32, i32, i32
  }
  func.func @transform_13(%arg0: i32, %arg1: i32) -> (i32, i32, i32) {
    %c0_i32 = arith.constant 0 : i32
    %c0_i32_0 = arith.constant 0 : i32
    %c0_i32_1 = arith.constant 0 : i32
    return %arg1, %c0_i32, %c0_i32_0 : i32, i32, i32
  }
  func.func @transform_14(%arg0: i32, %arg1: i32) -> (i32, i32, i32) {
    %c0_i32 = arith.constant 0 : i32
    %c0_i32_0 = arith.constant 0 : i32
    %c0_i32_1 = arith.constant 0 : i32
    return %arg1, %c0_i32, %c0_i32_0 : i32, i32, i32
  }
  func.func @transform_15(%arg0: i32, %arg1: i32) -> (i32, i32, i32) {
    %c0_i32 = arith.constant 0 : i32
    %c0_i32_0 = arith.constant 0 : i32
    %c0_i32_1 = arith.constant 0 : i32
    return %arg1, %c0_i32, %c0_i32_0 : i32, i32, i32
  }
  func.func @transform_16(%arg0: i32, %arg1: i32) -> (i32, i32, i32) {
    %c0_i32 = arith.constant 0 : i32
    %c0_i32_0 = arith.constant 0 : i32
    %c0_i32_1 = arith.constant 0 : i32
    return %arg0, %c0_i32, %c0_i32_0 : i32, i32, i32
  }
}

</mosaic_0001>

<bundles_post_ra>
// kernel: tpu_custom_call.1
= control target key start
LH: loop header
LB: loop body
LE: loop exit
PB: predicated region body
PF: predicated region fallthrough
CT: control target
= control target key end

     0   :  { %s4277_s0 = inlined_call_operand.hbm [shape: bf16[2,8,128], index: 0, kind: input, shape index: {}]   ;;  %s4278_s1 = inlined_call_operand.hbm [shape: f32[2,1,8], index: 1, kind: input, shape index: {}]   ;;  %s4279_s2 = inlined_call_operand.hbm [shape: f32[1,128], index: 2, kind: input, shape index: {}]   ;;  %s4280_s3 = inlined_call_operand.hbm [shape: f32[1,128], index: 3, kind: input, shape index: {}]   ;;  %s4281_s4 = inlined_call_operand.hbm [shape: bf16[2,128,384], index: 4, kind: input, shape index: {}]   ;;  %s4282_s5 = inlined_call_operand.vmem [shape: f32[2,1,384], index: 5, kind: input, shape index: {}]   ;;  %s4283_s6 = inlined_call_operand.hbm [shape: bf16[2,128,128], index: 6, kind: input, shape index: {}]   ;;  %s4284_s7 = inlined_call_operand.vmem [shape: f32[2,1,128], index: 7, kind: input, shape index: {}]   ;;  %s4285_s8 = inlined_call_operand.vmem [shape: f32[2,1,128], index: 8, kind: input, shape index: {}]   ;;  %s4286_s9 = inlined_call_operand.vmem [shape: f32[2,1,128], index: 9, kind: input, shape index: {}]   ;;  %s4287_s10 = inlined_call_operand.hbm [shape: bf16[2,128,256], index: 10, kind: input, shape index: {}]   ;;  %s4288_s11 = inlined_call_operand.vmem [shape: f32[2,1,256], index: 11, kind: input, shape index: {}]   ;;  %s4289_s12 = inlined_call_operand.hbm [shape: bf16[2,256,128], index: 12, kind: input, shape index: {}]   ;;  %s4290_s13 = inlined_call_operand.vmem [shape: f32[2,1,128], index: 13, kind: input, shape index: {}]   ;;  %s4291_s14 = inlined_call_operand.vmem [shape: f32[2,1,128], index: 14, kind: input, shape index: {}]   ;;  %s4292_s15 = inlined_call_operand.vmem [shape: f32[2,1,128], index: 15, kind: input, shape index: {}]   ;;  %s4293_s16 = inlined_call_operand.hbm [shape: bf16[2,8,128], index: 16, kind: output, shape index: {}]  }
   0x1   :  { %4327 = sst [smem:[#allocation41_spill]] %s4277_s0 }
   0x2   :  { %4328 = sst [smem:[#allocation42_spill]] %s4278_s1 }
   0x3   :  { %4329 = sst [smem:[#allocation43_spill]] %s4279_s2 }
   0x4   :  { %4330 = sst [smem:[#allocation44_spill]] %s4280_s3 }
   0x5   :  { %4331 = sst [smem:[#allocation45_spill]] %s4281_s4 }
   0x6   :  { %4332 = sst [smem:[#allocation46_spill]] %s4282_s5 }
   0x7   :  { %4333 = sst [smem:[#allocation47_spill]] %s4283_s6 }
   0x8   :  { %4334 = sst [smem:[#allocation48_spill]] %s4284_s7 }
   0x9   :  { %4335 = sst [smem:[#allocation49_spill]] %s4285_s8 }
   0xa   :  { %4336 = sst [smem:[#allocation50_spill]] %s4286_s9 }
   0xb   :  { %4337 = sst [smem:[#allocation51_spill]] %s4287_s10 }
   0xc   :  { %4338 = sst [smem:[#allocation52_spill]] %s4288_s11 }
   0xd   :  { %4339 = sst [smem:[#allocation53_spill]] %s4289_s12 }
   0xe   :  { %4340 = sst [smem:[#allocation54_spill]] %s4290_s13 }
   0xf   :  { %4341 = sst [smem:[#allocation55_spill]] %s4291_s14 }
  0x10   :  { %4342 = sst [smem:[#allocation56_spill]] %s4292_s15 }
  0x11   :  { %4343 = sst [smem:[#allocation57_spill]] %s4293_s16 }
  0x12   :  { %21 = vsyncpa [#allocation4], 0 }
  0x13   :  { %23 = vsyncpa [#allocation4 + $0x1], 0 }
  0x14   :  { %24 = vsyncpa [#allocation7], 0 }
  0x15   :  { %26 = vsyncpa [#allocation7 + $0x1], 0 }
  0x16   :  { %27 = vsyncpa [#allocation10], 0 }
  0x17   :  { %28 = vsyncpa [#allocation5], 0 }
  0x18   :  { %30 = vsyncpa [#allocation5 + $0x1], 0  ;;  %s3468_s21 = smov 0   ;;  %s3470_s22 = smov 0  }
  0x19   :  { %s3472_s23 = smov 0   ;;  %s3474_s24 = smov 0  }
  0x1a   :  { %s3476_s25 = smov 0   ;;  %s3478_s26 = smov 0  }
  0x1b   :  { %s3480_s27 = smov 0   ;;  %s3482_s28 = smov 0  }
  0x1c   :  { %s3484_s29 = smov 0   ;;  %s3486_s30 = smov 0  }
  0x1d   :  { %s3488_s0 = smov 0  }
  0x1e LB: > { %4344 = sst [smem:[#allocation25_spill]] %s3324_s22  ;;  %s3522_s17 = sadd.s32 4294967295, %s3360_s0   ;;  %s3360_s0 = sphi %s3488_s0, %s36_s0   ;;  %s3356_s30 = sphi %s3486_s30, %s4435_s30   ;;  %s3352_s29 = sphi %s3484_s29, %s4434_s29   ;;  %s3348_s28 = sphi %s3482_s28, %s4433_s28   ;;  %s3344_s27 = sphi %s3480_s27, %s4432_s27   ;;  %s3340_s26 = sphi %s3478_s26, %s4431_s26   ;;  %s3336_s25 = sphi %s3476_s25, %s4430_s25   ;;  %s3332_s24 = sphi %s3474_s24, %s4429_s24   ;;  %s3328_s23 = sphi %s3472_s23, %s4428_s23   ;;  %s3324_s22 = sphi %s3470_s22, %s4427_s22   ;;  %s3320_s21 = sphi %s3468_s21, %s4426_s21  }
  0x1f   : > { %4345 = sst [smem:[#allocation26_spill]] %s3328_s23  ;;  %p162_p0 = scmp.ne.s32.totalorder %s3324_s22, %s3320_s21 }
  0x20   : > { %4346 = sst [smem:[#allocation27_spill]] %s3332_s24  ;;  %p4296_p1 = scmp.eq.s32.totalorder %s3522_s17, 0 }
  0x21   : > { %4347 = sst [smem:[#allocation28_spill]] %s3336_s25  ;;  %p2444_p3 = scmp.ge.s32.totalorder %s3360_s0, 1 }
  0x22   : > { %4348 = sst [smem:[#allocation29_spill]] %s3340_s26  ;;  %p485_p4 = scmp.lt.s32.totalorder %s3360_s0, 5 }
  0x23   : > { %4349 = sst [smem:[#allocation30_spill]] %s3344_s27  ;;  %p3531_p5 = por %p162_p0, %p4296_p1 }
  0x24   : > { %4350 = sst [smem:[#allocation31_spill]] %s3348_s28  ;;  %p3535_p6 = pnand %p2444_p3, %p485_p4 }
  0x25   : > { %4351 = sst [smem:[#allocation32_spill]] %s3352_s29  ;;  %s3362_s20 = smov [#allocation8]  }
  0x26   : > { %4352 = sst [smem:[#allocation33_spill]] %s3356_s30  ;;  %s498_s16 = sshll.u32 %s3362_s20, 4  ;;  %s499_s16 = int_to_ptr.vmem [resolvable:$true] %s498_s16 }
  0x27   : > { %s4353_s18 = scalar_select %p3531_p5, 1, 0 }
  0x28   : > { %s4355_s19 = scalar_select %p3535_p6, 1, 0 }
  0x29   : > { %4354 = sst [smem:[#allocation34_spill]] %s4353_s18  ;;  %p2730_p7 = pneg %p3535_p6 }
  0x2a   : > { %s4357_s2 = sld [smem:[#allocation43_spill]] }
  0x2b   : > { %p3543_p8 = pnand %p2730_p7, %p4296_p1 }
  0x2d   : > { %s4356_s21 = scalar_select %p3543_p8, 1, 0 }
  0x2e   : > { %p4300_p10 = pneg %p3543_p8 }
  0x30   : > { %s2974_s14 = scalar_lea.hbm %s4357_s2, 16 }
  0x31   : > { %p2975_p9 = scmp.ne.s32.totalorder %s4357_s2, %s2974_s14  ;;  %p2981_p13 = scmp.lt.u32.totalorder %s2974_s14, %s4357_s2 }
  0x33   : > { %p2977_p11 = pnand %p4300_p10, %p2975_p9 }
  0x35   : > { %p2978_p12 = pneg %p2977_p11 }
  0x37   : > { %p2983_p0 = pnand %p2981_p13, %p2978_p12 }
  0x39   : > { %2986 = shalt.err (!%p2983_p0)
}
  0x3a   : > { %s2987_s15 = scalar_lea.vmem %s499_s16, 16  ;;  %s2994_s11 = scalar_lea.vmem %s499_s16, 32 }
  0x3b   : > { %p2988_p3 = scmp.ne.s32.totalorder %s499_s16, %s2987_s15  ;;  %p2995_p2 = scmp.lt.s32.totalorder %s499_s16, %s499_s16 }
  0x3c   : > { %p2996_p1 = scmp.lt.s32.totalorder %s2994_s11, %s2987_s15 }
  0x3d   : > { %p2990_p4 = pnand %p2988_p3, %p4300_p10 }
  0x3e   : > { %p2997_p5 = por %p2996_p1, %p2995_p2 }
  0x3f   : > { %p2991_p7 = pneg %p2990_p4 }
  0x41   : > { %p2998_p6 = pnand %p2997_p5, %p2991_p7 }
  0x43   : > { %3001 = shalt.err (!%p2998_p6)
}
  0x44   : > { %2733 = dma.hbm_to_vmem [thread:$0]  (!%p3543_p8), %s4357_s2, 16, %s499_s16, [#allocation7]  }
  0x45   : > { %s2443_s14 = sadd.s32 4294967294, %s3360_s0   ;;  %s45_s28 = sadd.s32 1, %s3352_s29 }
  0x46   : > { %p46_p1 = scmp.ge.s32.totalorder %s45_s28, 2  ;;  %s48_s20 = sadd.s32 1, %s3356_s30 }
  0x47   : > { %s55_s15 = sadd.s32 1, %s3340_s26  ;;  %p62_p2 = scmp.ne.s32.totalorder %s3340_s26, %s3336_s25 }
  0x48   : > { %s4437_s28 = smov (%p46_p1, %s45_s28), 0  ;;  %s4439_s20 = smov (!%p46_p1, %s48_s20), %s3356_s30 }
  0x49   : > { %4358 = sst [smem:[#allocation35_spill]] %s4437_s28  ;;  %p63_p5 = scmp.eq.s32.totalorder %s3360_s0, 0 }
  0x4a   : > { %p68_p6 = scmp.ne.s32.totalorder %s3336_s25, %s3332_s24  ;;  %p50_p9 = scmp.ge.s32.totalorder %s4439_s20, 2 }
  0x4b   : > { %s146_s16 = ssub.s32 %s3352_s29, %s4437_s28  ;;  %p3588_p11 = por %p63_p5, %p62_p2 }
  0x4c   : > { %p4360_p12 = scmp.eq.s32.totalorder %s3522_s17, 0  ;;  %s4441_s20 = smov (%p50_p9, %s4439_s20), 0 }
  0x4d   : > { %4362 = sst [smem:[#allocation36_spill]] %s4441_s20  ;;  %p147_p0 = scmp.eq.s32.totalorder %s146_s16, 0 }
  0x4e   : > { %p3597_p13 = por %p4360_p12, %p68_p6  ;;  %s149_s5 = sadd.s32 1, %s3328_s23 }
  0x4f   : > { %s52_s2 = ssub.s32 %s3356_s30, %s4441_s20  ;;  %p156_p3 = scmp.ne.s32.totalorder %s3328_s23, %s3324_s22 }
  0x50   : > { %s4361_s13 = scalar_select %p3597_p13, 1, 0 }
  0x51   : > { %p53_p4 = scmp.eq.s32.totalorder %s52_s2, 0  ;;  %p4363_p7 = scmp.eq.s32.totalorder %s3522_s17, 3 }
  0x52   : > { %s3618_s9 = scalar_select %p147_p0, %s3328_s23, %s149_s5  }
  0x53   : > { %p3613_p1 = por %p4363_p7, %p62_p2  ;;  %p3625_p9 = por %p156_p3, %p63_p5 }
  0x54   : > { %4366 = sst [smem:[#allocation38_spill]] %s3618_s9  ;;  %p478_p12 = scmp.eq.s32.totalorder %s2443_s14, 3 }
  0x55   : > { %s4364_s28 = scalar_select %p3613_p1, 1, 0 }
  0x56   : > { %s3621_s8 = scalar_select %p53_p4, %s3340_s26, %s55_s15  }
  0x57   : > { %4365 = sst [smem:[#allocation37_spill]] %s4364_s28  ;;  %p4311_p10 = scmp.lt.s32.totalorder %s3360_s0, 4 }
  0x58   : > { %4367 = sst [smem:[#allocation39_spill]] %s3621_s8  ;;  %p3634_p13 = por %p478_p12, %p68_p6 }
  0x59   : > { %s4307_s7 = sand.u32 1, %s3340_s26   ;;  %s2449_s28 = sshll.u32 %s3356_s30, 6 }
  0x5a   : > { %s4369_s2 = scalar_select %p3634_p13, 1, 0 }
  0x5b   : > { %s2448_s5 = sshll.u32 %s4307_s7, 2  ;;  %s4371_s8 = sld [smem:[#allocation41_spill]] }
  0x5c   : > { %4370 = sst [smem:[#allocation40_spill]] %s4369_s2  ;;  %p3651_p2 = pnand %p4311_p10, %p3588_p11 }
  0x5d   : > { %s524_s20 = scalar_lea.vmem [#allocation3], %s2448_s5  ;;  %s4373_s7 = sand.u32 1, %s3360_s0  }
  0x5e   : > { %s531_s2 = sshll.u32 %s524_s20, 4  ;;  %s3659_s9 = scalar_lea.sflag [#allocation4], %s4373_s7  ;;  %s3655_s2 = int_to_ptr.vmem [resolvable:$true] %s531_s2 }
  0x5f   : > { %p3004_p6 = pneg %p3651_p2 }
  0x61   : > { %s3645_s27 = scalar_lea.hbm %s4371_s8, %s2449_s28  ;;  %s3007_s24 = scalar_lea.hbm %s4371_s8, 128 }
  0x62   : > { %s3002_s28 = scalar_lea.hbm %s3645_s27, 64  ;;  %p3008_p3 = scmp.lt.u32.totalorder %s3645_s27, %s4371_s8 }
  0x63   : > { %p3003_p5 = scmp.ne.s32.totalorder %s3645_s27, %s3002_s28  ;;  %p3009_p4 = scmp.lt.u32.totalorder %s3007_s24, %s3002_s28 }
  0x64   : > { %p3011_p12 = scmp.lt.u32.totalorder %s3002_s28, %s3645_s27 }
  0x65   : > { %p3005_p0 = pnand %p3004_p6, %p3003_p5  ;;  %p3010_p7 = por %p3009_p4, %p3008_p3 }
  0x67   : > { %p3006_p11 = pneg %p3005_p0  ;;  %p3012_p10 = por %p3011_p12, %p3010_p7 }
  0x69   : > { %p3013_p13 = pnand %p3012_p10, %p3006_p11 }
  0x6b   : > { %3016 = shalt.err (!%p3013_p13)
}
  0x6c   : > { %s3017_s7 = scalar_lea.vmem %s3655_s2, 64  ;;  %s3363_s20 = smov [#allocation3]  }
  0x6d   : > { %p3018_p5 = scmp.ne.s32.totalorder %s3655_s2, %s3017_s7  ;;  %s3022_s11 = sshll.u32 %s3363_s20, 4  ;;  %s3023_s11 = int_to_ptr.vmem [resolvable:$false] %s3022_s11 }
  0x6e   : > { %s3024_s18 = scalar_lea.vmem %s3023_s11, 128  ;;  %p3025_p8 = scmp.lt.s32.totalorder %s3655_s2, %s3023_s11 }
  0x6f   : > { %p3020_p0 = pnand %p3018_p5, %p3004_p6  ;;  %p3026_p3 = scmp.lt.s32.totalorder %s3024_s18, %s3017_s7 }
  0x71   : > { %p3021_p1 = pneg %p3020_p0  ;;  %p3027_p4 = por %p3026_p3, %p3025_p8 }
  0x73   : > { %p3028_p7 = pnand %p3027_p4, %p3021_p1 }
  0x75   : > { %3031 = shalt.err (!%p3028_p7)
}
  0x76   : > { %2740 = dma.hbm_to_vmem [thread:$0]  (!%p3651_p2), %s3645_s27, 64, %s3655_s2, %s3659_s9  }
  0x77   : > { %p4374_p10 = scmp.lt.s32.totalorder %s3360_s0, 4  ;;  %s2450_s28 = sshll.u32 %s3356_s30, 4 }
  0x78   : > { %s4376_s15 = sand.u32 1, %s3340_s26   ;;  %s4377_s1 = sld [smem:[#allocation42_spill]] }
  0x79   : > { %p3691_p13 = pnand %p4374_p10, %p3625_p9  ;;  %s541_s5 = scalar_lea.vmem [#allocation6], %s4376_s15 }
  0x7a   : > { %s548_s7 = sshll.u32 %s541_s5, 4  ;;  %s3706_s27 = sand.u32 1, %s3328_s23   ;;  %s3703_s7 = int_to_ptr.vmem [resolvable:$true] %s548_s7 }
  0x7b   : > { %s4375_s24 = scalar_select %p3691_p13, 1, 0 }
  0x7c   : > { %s4378_s16 = sand.u32 1, %s3360_s0  }
  0x7d   : > { %s3710_s2 = scalar_lea.sflag [#allocation7], %s4378_s16 }
  0x7e   : > { %s3701_s18 = scalar_lea.hbm %s4377_s1, %s2450_s28  ;;  %s3037_s5 = scalar_lea.hbm %s4377_s1, 32 }
  0x7f   : > { %s3032_s8 = scalar_lea.hbm %s3701_s18, 16  ;;  %p3038_p11 = scmp.lt.u32.totalorder %s3701_s18, %s4377_s1 }
  0x80   : > { %p3033_p8 = scmp.ne.s32.totalorder %s3701_s18, %s3032_s8  ;;  %p3039_p12 = scmp.lt.u32.totalorder %s3037_s5, %s3032_s8 }
  0x81   : > { %p3041_p0 = scmp.lt.u32.totalorder %s3032_s8, %s3701_s18 }
  0x82   : > { %p3035_p1 = pnand %p3033_p8, %p3004_p6  ;;  %p3040_p5 = por %p3039_p12, %p3038_p11 }
  0x84   : > { %p3036_p9 = pneg %p3035_p1  ;;  %p3042_p3 = por %p3041_p0, %p3040_p5 }
  0x86   : > { %p3043_p4 = pnand %p3042_p3, %p3036_p9 }
  0x88   : > { %3046 = shalt.err (!%p3043_p4)
}
  0x89   : > { %s3047_s16 = scalar_lea.vmem %s3703_s7, 16  ;;  %s3364_s15 = smov [#allocation6]  }
  0x8a   : > { %p3048_p7 = scmp.ne.s32.totalorder %s3703_s7, %s3047_s16  ;;  %s3052_s28 = sshll.u32 %s3364_s15, 4  ;;  %s3053_s28 = int_to_ptr.vmem [resolvable:$false] %s3052_s28 }
  0x8b   : > { %s3054_s20 = scalar_lea.vmem %s3053_s28, 32  ;;  %p3055_p1 = scmp.lt.s32.totalorder %s3703_s7, %s3053_s28 }
  0x8c   : > { %p3050_p10 = pnand %p3048_p7, %p3004_p6  ;;  %p3056_p11 = scmp.lt.s32.totalorder %s3054_s20, %s3047_s16 }
  0x8e   : > { %p3051_p8 = pneg %p3050_p10  ;;  %p3057_p12 = por %p3056_p11, %p3055_p1 }
  0x90   : > { %p3058_p5 = pnand %p3057_p12, %p3051_p8 }
  0x92   : > { %3061 = shalt.err (!%p3058_p5)
}
  0x93   : > { %2743 = dma.hbm_to_vmem [thread:$0]  (!%p3651_p2), %s3701_s18, 16, %s3703_s7, %s3710_s2  }
  0x94   : > { %s2704_s8 = smul.u32 192, %s3706_s27  ;;  %s2452_s11 = sshll.u32 %s3706_s27, 6 }
  0x95   : > { %s2705_s5 = smul.u32 3072, %s3352_s29  ;;  %s4379_s4 = sld [smem:[#allocation45_spill]] }
  0x96   : > { %s559_s14 = scalar_lea.vmem [#allocation11], %s2704_s8  ;;  %p3750_p2 = pneg %p3691_p13 }
  0x97   : > { %s566_s28 = sshll.u32 %s559_s14, 4  ;;  %s3744_s28 = int_to_ptr.vmem [resolvable:$true] %s566_s28 }
  0x98   : > { %s4380_s7 = scalar_select %p3750_p2, 1, 0 }
  0x9b   : > { %s3742_s16 = scalar_lea.hbm %s4379_s4, %s2705_s5  ;;  %s3067_s5 = scalar_lea.hbm %s4379_s4, 6144 }
  0x9c   : > { %s3062_s20 = scalar_lea.hbm %s3742_s16, 3072  ;;  %p3068_p3 = scmp.lt.u32.totalorder %s3742_s16, %s4379_s4 }
  0x9d   : > { %p3063_p6 = scmp.ne.s32.totalorder %s3742_s16, %s3062_s20  ;;  %p3069_p4 = scmp.lt.u32.totalorder %s3067_s5, %s3062_s20 }
  0x9e   : > { %p3071_p10 = scmp.lt.u32.totalorder %s3062_s20, %s3742_s16 }
  0x9f   : > { %p3065_p9 = pnand %p3750_p2, %p3063_p6  ;;  %p3070_p7 = por %p3069_p4, %p3068_p3 }
  0xa1   : > { %p3066_p0 = pneg %p3065_p9  ;;  %p3072_p8 = por %p3071_p10, %p3070_p7 }
  0xa3   : > { %p3073_p1 = pnand %p3072_p8, %p3066_p0 }
  0xa5   : > { %3076 = shalt.err (!%p3073_p1)
}
  0xa6   : > { %s3077_s14 = scalar_lea.vmem %s3744_s28, 3072  ;;  %s3365_s1 = smov [#allocation11]  }
  0xa7   : > { %p3078_p11 = scmp.ne.s32.totalorder %s3744_s28, %s3077_s14  ;;  %s3082_s18 = sshll.u32 %s3365_s1, 4  ;;  %s3083_s18 = int_to_ptr.vmem [resolvable:$false] %s3082_s18 }
  0xa8   : > { %s3084_s15 = scalar_lea.vmem %s3083_s18, 6144  ;;  %p3085_p6 = scmp.lt.s32.totalorder %s3744_s28, %s3083_s18 }
  0xa9   : > { %p3080_p12 = pnand %p3078_p11, %p3750_p2  ;;  %p3086_p9 = scmp.lt.s32.totalorder %s3084_s15, %s3077_s14 }
  0xab   : > { %p3081_p5 = pneg %p3080_p12  ;;  %p3087_p3 = por %p3086_p9, %p3085_p6 }
  0xad   : > { %p3088_p4 = pnand %p3087_p3, %p3081_p5 }
  0xaf   : > { %3091 = shalt.err (!%p3088_p4)
}
  0xb0   : > { %s3366_s20 = smov 192   ;;  %s3367_s5 = smov 12  }
  0xb1   : > { %2746 = dma.hbm_to_vmem [thread:$0]  (!%p3691_p13), %s3742_s16, 3072, %s3744_s28, %s3659_s9, %s3366_s20, %s3366_s20, %s3367_s5  }
  0xb2   : > { %s2557_s8 = sshll.u32 %s3352_s29, 10  ;;  %s587_s1 = scalar_lea.vmem [#allocation12], %s2452_s11 }
  0xb3   : > { %s594_s4 = sshll.u32 %s587_s1, 4  ;;  %s4381_s6 = sld [smem:[#allocation47_spill]]  ;;  %s3782_s4 = int_to_ptr.vmem [resolvable:$true] %s594_s4 }
  0xb9   : > { %s3780_s15 = scalar_lea.hbm %s4381_s6, %s2557_s8  ;;  %s3097_s11 = scalar_lea.hbm %s4381_s6, 2048 }
  0xba   : > { %s3092_s30 = scalar_lea.hbm %s3780_s15, 1024  ;;  %p3098_p8 = scmp.lt.u32.totalorder %s3780_s15, %s4381_s6 }
  0xbb   : > { %p3093_p0 = scmp.ne.s32.totalorder %s3780_s15, %s3092_s30  ;;  %p3099_p1 = scmp.lt.u32.totalorder %s3097_s11, %s3092_s30 }
  0xbc   : > { %p3101_p12 = scmp.lt.u32.totalorder %s3092_s30, %s3780_s15 }
  0xbd   : > { %p3095_p7 = pnand %p3093_p0, %p3750_p2  ;;  %p3100_p11 = por %p3099_p1, %p3098_p8 }
  0xbf   : > { %p3096_p10 = pneg %p3095_p7  ;;  %p3102_p5 = por %p3101_p12, %p3100_p11 }
  0xc1   : > { %p3103_p6 = pnand %p3102_p5, %p3096_p10 }
  0xc3   : > { %3106 = shalt.err (!%p3103_p6)
}
  0xc4   : > { %s3107_s8 = scalar_lea.vmem %s3782_s4, 1024  ;;  %s3368_s1 = smov [#allocation12]  }
  0xc5   : > { %p3108_p9 = scmp.ne.s32.totalorder %s3782_s4, %s3107_s8  ;;  %s3112_s18 = sshll.u32 %s3368_s1, 4  ;;  %s3113_s18 = int_to_ptr.vmem [resolvable:$false] %s3112_s18 }
  0xc6   : > { %s3114_s14 = scalar_lea.vmem %s3113_s18, 2048  ;;  %p3115_p0 = scmp.lt.s32.totalorder %s3782_s4, %s3113_s18 }
  0xc7   : > { %p3110_p3 = pnand %p3108_p9, %p3750_p2  ;;  %p3116_p7 = scmp.lt.s32.totalorder %s3114_s14, %s3107_s8 }
  0xc9   : > { %p3111_p4 = pneg %p3110_p3  ;;  %p3117_p8 = por %p3116_p7, %p3115_p0 }
  0xcb   : > { %p3118_p1 = pnand %p3117_p8, %p3111_p4 }
  0xcd   : > { %3121 = shalt.err (!%p3118_p1)
}
  0xce   : > { %s3369_s30 = smov 64   ;;  %s3370_s16 = smov 4  }
  0xcf   : > { %2749 = dma.hbm_to_vmem [thread:$0]  (!%p3691_p13), %s3780_s15, 1024, %s3782_s4, %s3710_s2, %s3369_s30, %s3369_s30, %s3370_s16  }
  0xd0   : > { %s2455_s28 = sshll.u32 %s3706_s27, 7  ;;  %s3371_s11 = smov [#allocation9]  }
  0xd1   : > { %s509_s20 = sshll.u32 %s3371_s11, 4  ;;  %s2558_s5 = sshll.u32 %s3352_s29, 11  ;;  %s510_s20 = int_to_ptr.vmem [resolvable:$true] %s509_s20 }
  0xd2   : > { %s4382_s3 = sld [smem:[#allocation44_spill]]  ;;  %p4383_p11 = scmp.ne.s32.totalorder %s4356_s21, 0 }
  0xd4   : > { %p4384_p12 = pneg %p4383_p11 }
  0xd8   : > { %s3122_s18 = scalar_lea.hbm %s4382_s3, 16 }
  0xd9   : > { %p3123_p10 = scmp.ne.s32.totalorder %s4382_s3, %s3122_s18  ;;  %p3129_p9 = scmp.lt.u32.totalorder %s3122_s18, %s4382_s3 }
  0xdb   : > { %p3125_p5 = pnand %p3123_p10, %p4384_p12 }
  0xdd   : > { %p3126_p6 = pneg %p3125_p5 }
  0xdf   : > { %p3131_p3 = pnand %p3129_p9, %p3126_p6 }
  0xe1   : > { %3134 = shalt.err (!%p3131_p3)
}
  0xe2   : > { %s3135_s4 = scalar_lea.vmem %s510_s20, 16  ;;  %p4385_p0 = pmov %p4384_p12 }
  0xe3   : > { %p3136_p4 = scmp.ne.s32.totalorder %s510_s20, %s3135_s4  ;;  %s3142_s15 = scalar_lea.vmem %s510_s20, 32 }
  0xe4   : > { %p3143_p1 = scmp.lt.s32.totalorder %s510_s20, %s510_s20  ;;  %p3144_p13 = scmp.lt.s32.totalorder %s3142_s15, %s3135_s4 }
  0xe5   : > { %p3138_p7 = pnand %p3136_p4, %p4385_p0 }
  0xe6   : > { %p3145_p2 = por %p3144_p13, %p3143_p1 }
  0xe7   : > { %p3139_p8 = pneg %p3138_p7 }
  0xe9   : > { %p3146_p10 = pnand %p3145_p2, %p3139_p8 }
  0xeb   : > { %3149 = shalt.err (!%p3146_p10)
}
  0xec   : > { %2736 = dma.hbm_to_vmem [thread:$0]  (!%p4383_p11), %s4382_s3, 16, %s510_s20, [#allocation10]  }
  0xed   : > { %s4386_s10 = sld [smem:[#allocation51_spill]]  ;;  %s626_s1 = scalar_lea.vmem [#allocation13], %s2455_s28 }
  0xee   : > { %s633_s21 = sshll.u32 %s626_s1, 4  ;;  %p4387_p2 = scmp.ne.s32.totalorder %s4380_s7, 0  ;;  %s3840_s21 = int_to_ptr.vmem [resolvable:$true] %s633_s21 }
  0xf3   : > { %s3836_s8 = scalar_lea.hbm %s4386_s10, %s2558_s5  ;;  %s3155_s4 = scalar_lea.hbm %s4386_s10, 4096 }
  0xf4   : > { %s3150_s18 = scalar_lea.hbm %s3836_s8, 2048  ;;  %p3156_p5 = scmp.lt.u32.totalorder %s3836_s8, %s4386_s10 }
  0xf5   : > { %p3151_p13 = scmp.ne.s32.totalorder %s3836_s8, %s3150_s18  ;;  %p3157_p6 = scmp.lt.u32.totalorder %s3155_s4, %s3150_s18 }
  0xf6   : > { %p3159_p3 = scmp.lt.u32.totalorder %s3150_s18, %s3836_s8 }
  0xf7   : > { %p3153_p12 = pnand %p3151_p13, %p4387_p2  ;;  %p3158_p9 = por %p3157_p6, %p3156_p5 }
  0xf9   : > { %p3154_p11 = pneg %p3153_p12  ;;  %p3160_p4 = por %p3159_p3, %p3158_p9 }
  0xfb   : > { %p3161_p0 = pnand %p3160_p4, %p3154_p11 }
  0xfd   : > { %3164 = shalt.err (!%p3161_p0)
}
  0xfe   : > { %s3165_s23 = scalar_lea.vmem %s3840_s21, 2048  ;;  %s3372_s26 = smov [#allocation13]  }
  0xff   : > { %p3166_p7 = scmp.ne.s32.totalorder %s3840_s21, %s3165_s23  ;;  %s3170_s11 = sshll.u32 %s3372_s26, 4  ;;  %s3171_s11 = int_to_ptr.vmem [resolvable:$false] %s3170_s11 }
 0x100   : > { %s3172_s1 = scalar_lea.vmem %s3171_s11, 4096  ;;  %p3173_p10 = scmp.lt.s32.totalorder %s3840_s21, %s3171_s11 }
 0x101   : > { %p3168_p8 = pnand %p3166_p7, %p4387_p2  ;;  %p3174_p13 = scmp.lt.s32.totalorder %s3172_s1, %s3165_s23 }
 0x103   : > { %p3169_p1 = pneg %p3168_p8  ;;  %p3175_p12 = por %p3174_p13, %p3173_p10 }
 0x105   : > { %p3176_p5 = pnand %p3175_p12, %p3169_p1 }
 0x107   : > { %3179 = shalt.err (!%p3176_p5)
}
 0x108   : > { %s3373_s18 = smov 128   ;;  %s3374_s20 = smov 8  }
 0x109   : > { %p4388_p11 = scmp.ne.s32.totalorder %s4375_s24, 0  ;;  %s4389_s12 = sld [smem:[#allocation53_spill]] }
 0x10a   : > { %s654_s6 = scalar_lea.vmem [#allocation14], %s2455_s28 }
 0x10b   : > { %2752 = dma.hbm_to_vmem [thread:$0]  (!%p4388_p11), %s3836_s8, 2048, %s3840_s21, %s3659_s9, %s3373_s18, %s3373_s18, %s3374_s20  }
 0x10c   : > { %s661_s23 = sshll.u32 %s654_s6, 4  ;;  %s3873_s23 = int_to_ptr.vmem [resolvable:$true] %s661_s23 }
 0x10f   : > { %s3869_s15 = scalar_lea.hbm %s4389_s12, %s2558_s5  ;;  %s3185_s21 = scalar_lea.hbm %s4389_s12, 4096 }
 0x110   : > { %s3180_s26 = scalar_lea.hbm %s3869_s15, 2048  ;;  %p3186_p4 = scmp.lt.u32.totalorder %s3869_s15, %s4389_s12 }
 0x111   : > { %p3181_p6 = scmp.ne.s32.totalorder %s3869_s15, %s3180_s26  ;;  %p3187_p0 = scmp.lt.u32.totalorder %s3185_s21, %s3180_s26 }
 0x112   : > { %p3189_p8 = scmp.lt.u32.totalorder %s3180_s26, %s3869_s15 }
 0x113   : > { %p3183_p9 = pnand %p3181_p6, %p4387_p2  ;;  %p3188_p7 = por %p3187_p0, %p3186_p4 }
 0x115   : > { %p3184_p3 = pneg %p3183_p9  ;;  %p3190_p1 = por %p3189_p8, %p3188_p7 }
 0x117   : > { %p3191_p10 = pnand %p3190_p1, %p3184_p3 }
 0x119   : > { %3194 = shalt.err (!%p3191_p10)
}
 0x11a   : > { %s3195_s27 = scalar_lea.vmem %s3873_s23, 2048  ;;  %s3375_s28 = smov [#allocation14]  }
 0x11b   : > { %p3196_p13 = scmp.ne.s32.totalorder %s3873_s23, %s3195_s27  ;;  %s3200_s1 = sshll.u32 %s3375_s28, 4  ;;  %s3201_s1 = int_to_ptr.vmem [resolvable:$false] %s3200_s1 }
 0x11c   : > { %s3202_s18 = scalar_lea.vmem %s3201_s1, 4096  ;;  %p3203_p6 = scmp.lt.s32.totalorder %s3873_s23, %s3201_s1 }
 0x11d   : > { %p3198_p12 = pnand %p3196_p13, %p4387_p2  ;;  %p3204_p9 = scmp.lt.s32.totalorder %s3202_s18, %s3195_s27 }
 0x11f   : > { %p3199_p5 = pneg %p3198_p12  ;;  %p3205_p4 = por %p3204_p9, %p3203_p6 }
 0x121   : > { %p3206_p0 = pnand %p3205_p4, %p3199_p5 }
 0x123   : > { %3209 = shalt.err (!%p3206_p0)
}
 0x124   : > { %2755 = dma.hbm_to_vmem [thread:$0]  (!%p4388_p11), %s3869_s15, 2048, %s3873_s23, %s3710_s2, %s3369_s30, %s3369_s30, %s3370_s16  }
 0x125   : > { %p4390_p2 = scmp.ne.s32.totalorder %s4355_s19, 0 }
 0x126   : > { %s693_s7 = sand.u32 (!%p4390_p2), 1, %s3522_s17   ;;  %s3904_s20 = sand.u32 (!%p4390_p2), 1, %s3336_s25  }
 0x127   : > { %691 = sbr.rel (%p4390_p2) target bundleno = 3657 (0xe49), region = 84  ;;  %s4323_s14 = sshll.u32 (!%p4390_p2), %s3904_s20, 2 }
 0x128   : > { %s694_s24 = scalar_lea.sflag (!%p4390_p2), [#allocation4], %s693_s7  ;;  %s3909_s4 = scalar_lea.vmem (!%p4390_p2), [#allocation3], %s4323_s14 }
 0x129   : > { %p4391_p3 = scmp.ne.s32.totalorder (!%p4390_p2), %s4361_s13, 0 }
 0x12e   : > { %3283 = dma.done.wait (%p4391_p3), %s694_s24, 64  }
 0x12f   : > { %3285 = vsyncadd (%p4391_p3), %s694_s24, 4294967232  ;;  %s703_s19 = scalar_lea.sflag [#allocation7], %s693_s7 }
 0x130   : > { %3287 = dma.done.wait (%p4391_p3), %s703_s19, 16  }
 0x131   : > { %3289 = vsyncadd (%p4391_p3), %s703_s19, 4294967280  ;;  %p4392_p11 = scmp.eq.s32.totalorder %s3522_s17, 0 }
 0x133   : > { %3291 = dma.done.wait (%p4392_p11), [#allocation7], 16   ;;  %p4393_p7 = pmov %p4392_p11 }
 0x135   : > { %3293 = vsyncadd (%p4393_p7), [#allocation7], 4294967280  ;;  %p4394_p8 = pmov %p4393_p7 }
 0x136   : > { %p4395_p1 = pmov %p4393_p7 }
 0x137   : > { %3295 = dma.done.wait (%p4394_p8), [#allocation10], 16  }
 0x138   : > { %3297 = vsyncadd (%p4395_p1), [#allocation10], 4294967280  ;;  %s4396_s30 = sld [smem:[#allocation34_spill]]  ;;  %s720_s16 = sand.u32 1, %s3324_s22  }
 0x139   : > { %s2706_s15 = smul.u32 192, %s720_s16 }
 0x13b   : > { %s3929_s6 = scalar_lea.vmem [#allocation11], %s2706_s15 }
 0x13e   : > { %p4397_p10 = scmp.ne.s32.totalorder %s4396_s30, 0 }
 0x140   : > { %3299 = dma.done.wait (%p4397_p10), %s694_s24, 3072  }
 0x141   : > { %3301 = vsyncadd (%p4397_p10), %s694_s24, 4294964224  ;;  %s2465_s13 = sshll.u32 %s720_s16, 6 }
 0x142   : > { %s3935_s23 = scalar_lea.vmem [#allocation12], %s2465_s13 }
 0x143   : > { %3303 = dma.done.wait (%p4397_p10), %s703_s19, 1024  }
 0x144   : > { %3305 = vsyncadd (%p4397_p10), %s703_s19, 4294966272  ;;  %s2466_s17 = sshll.u32 %s720_s16, 7 }
 0x145   : > { %s3941_s26 = scalar_lea.vmem [#allocation13], %s2466_s17 }
 0x146   : > { %3307 = dma.done.wait (%p4397_p10), %s694_s24, 2048  }
 0x147   : > { %3309 = vsyncadd (%p4397_p10), %s694_s24, 4294965248  ;;  %s3947_s9 = scalar_lea.vmem [#allocation14], %s2466_s17 }
 0x148   : > { %3311 = dma.done.wait (%p4397_p10), %s703_s19, 2048  }
 0x149   : > { %3313 = vsyncadd (%p4397_p10), %s703_s19, 4294965248  ;;  %s4398_s8 = sld [smem:[#allocation30_spill]]  ;;  %s4399_s28 = sld [smem:[#allocation48_spill]] }
 0x14a   : > { %s4402_s14 = sld [smem:[#allocation46_spill]]  ;;  %s4403_s25 = sld [smem:[#allocation52_spill]] }
 0x14b   : > { %s4405_s19 = sld [smem:[#allocation55_spill]]  ;;  %s4406_s13 = sld [smem:[#allocation56_spill]] }
 0x14f   : > { %p848_p13 = scmp.lt.s32.totalorder %s4398_s8, 1  ;;  %p2470_p12 = scmp.ne.s32.totalorder %s4398_s8, 0 }
 0x150   : > { %v879_v0 = vld [vmem:[%s3909_s4] sm:$0xf] (!%p2470_p12)  ;;  %v2471_v10 = vld [vmem:[#allocation8] ss:$0 sm:$0xff] (!%p2470_p12)  ;;  %v2472_v12 = vld [vmem:[#allocation9] ss:$0 sm:$0xff] (!%p2470_p12) }
 0x151   : > { %s3955_s21 = scalar_select %p848_p13, %s4398_s8, 1 }
 0x152   : > { %v882_v1 = vunpack.c.l.bf16 (!%p2470_p12), %v879_v0 }
 0x153   : > { %s2707_s5 = smul.u32 3, %s3955_s21  ;;  %s854_s1 = scalar_lea.vmem %s4399_s28, %s3955_s21 }
 0x154   : > { %s2469_s10 = sshll.u32 %s3955_s21, 1  ;;  %s4404_s28 = sld [smem:[#allocation54_spill]]  ;;  %883 = vadd.xlane.f32.xlu0 (!%p2470_p12), %v882_v1 }
 0x155   : > { %s3973_s3 = scalar_lea.vmem %s4402_s14, %s2707_s5  ;;  %s3979_s22 = scalar_lea.vmem %s4403_s25, %s2469_s10 }
 0x156   : > { %s870_s30 = scalar_lea.vmem %s4405_s19, %s3955_s21  ;;  %s873_s2 = scalar_lea.vmem %s4406_s13, %s3955_s21 }
 0x157   : > { %s4407_s14 = sshll.u32 %s3904_s20, 2  ;;  %878 = sbr.rel (%p2470_p12) target bundleno = 652 (0x28c), region = 120 }
 0x158   : > { %s3995_s5 = scalar_lea.vmem [#allocation15], %s4407_s14 }
 0x15a   : > { %s867_s18 = scalar_lea.vmem %s4404_s28, %s3955_s21 }
 0x1e1   : > { %v884_v2 = vpop.xlane.xlu0 %883 }
 0x1e2   : > { %v886_v3 = vmul.f32 0.0078125, %v884_v2 }
 0x1e4   : > { %v887_v4 = vsub.f32 %v882_v1, %v886_v3 }
 0x1e6   : > { %v888_v5 = vmul.f32 %v887_v4, %v887_v4 }
 0x1e8   : > { %889 = vadd.xlane.f32.xlu0 %v888_v5 }
 0x275   : > { %v890_v6 = vpop.xlane.xlu0 %889 }
 0x276   : > { %v891_v7 = vmul.f32 0.0078125, %v890_v6 }
 0x278   : > { %v892_v8 = vadd.f32 1e-12, %v891_v7 }
 0x27a   : > { %2868 = vrsqrt.f32 %v892_v8 }
 0x284   : > { %v2869_v9 = vpop.eup %2868 }
 0x285   : > { %v894_v11 = vmul.f32 %v2869_v9, %v887_v4 }
 0x287   : > { %v901_v13 = vmul.f32 %v2471_v10, %v894_v11 }
 0x289   : > { %v908_v14 = vadd.f32 %v2472_v12, %v901_v13 }
 0x28b   : > { %909 = vst [vmem:[#allocation2] sm:$0xff] %v908_v14 }
 0x28c PF: > { %v2870_v15 = vld [vmem:[%s3929_s6 + $0x4] ss:$12 sps:$4 sm:$0xff]   ;;  %v2872_v16 = vld [vmem:[%s3929_s6] ss:$12 sps:$4 sm:$0xff]   ;;  %v3376_v17 = vmov 0   ;;  %v3377_v18 = vmov 0.0   ;;  %v947_v43 = vlaneseq }
 0x28d   : > { %1122 = vmatprep.mubr.bf16.mxu0 %v3376_v17  ;;  %2616 = vmatprep.subr.bf16.mxu1 %v3377_v18  ;;  %v2873_v19 = vld [vmem:[%s3929_s6 + $0x1c] ss:$12 sps:$4 sm:$0xff]   ;;  %v2875_v20 = vld [vmem:[%s3929_s6 + $0x18] ss:$12 sps:$4 sm:$0xff]   ;;  %v2876_v21 = vld [vmem:[%s3929_s6 + $0x34] ss:$12 sps:$4 sm:$0xff]  }
 0x28e   : > { %1090 = vmatprep.subr.bf16.mxu0 %v2870_v15  ;;  %v2878_v22 = vld [vmem:[%s3929_s6 + $0x30] ss:$12 sps:$4 sm:$0xff]   ;;  %v2879_v23 = vld [vmem:[%s3929_s6 + $0x4c] ss:$12 sps:$4 sm:$0xff]   ;;  %v2881_v24 = vld [vmem:[%s3929_s6 + $0x48] ss:$12 sps:$4 sm:$0xff]  }
 0x28f   : > { %1091 = vmatpush1.bf16.msra.mxu0 %v2872_v16  ;;  %v2894_v25 = vld [vmem:[%s3929_s6 + $0x8] ss:$12 sps:$4 sm:$0xff]   ;;  %v2882_v26 = vld [vmem:[%s3929_s6 + $0x64] ss:$12 sps:$4 sm:$0xff]   ;;  %v2895_v27 = vld [vmem:[%s3929_s6 + $0x20] ss:$12 sps:$4 sm:$0xff]  }
 0x290   : > { %1092 = vmatprep.subr.bf16.mxu0 %v2873_v19  ;;  %2617 = vmatpush3.bf16.msra.mxu1 %v2894_v25  ;;  %v2884_v28 = vld [vmem:[%s3929_s6 + $0x60] ss:$12 sps:$4 sm:$0xff]   ;;  %v2885_v29 = vld [vmem:[%s3929_s6 + $0x7c] ss:$12 sps:$4 sm:$0xff]   ;;  %v2887_v30 = vld [vmem:[%s3929_s6 + $0x78] ss:$12 sps:$4 sm:$0xff]  }
 0x291   : > { %2618 = vmatprep.subr.bf16.mxu1 %v3377_v18  ;;  %v2896_v31 = vld [vmem:[%s3929_s6 + $0x38] ss:$12 sps:$4 sm:$0xff]   ;;  %v2888_v32 = vld [vmem:[%s3929_s6 + $0x94] ss:$12 sps:$4 sm:$0xff]   ;;  %v2897_v33 = vld [vmem:[%s3929_s6 + $0x50] ss:$12 sps:$4 sm:$0xff]  }
 0x292   : > { %v2890_v34 = vld [vmem:[%s3929_s6 + $0x90] ss:$12 sps:$4 sm:$0xff]   ;;  %v2891_v35 = vld [vmem:[%s3929_s6 + $0xac] ss:$12 sps:$4 sm:$0xff]   ;;  %v2898_v36 = vld [vmem:[%s3929_s6 + $0x68] ss:$12 sps:$4 sm:$0xff]  }
 0x293   : > { %1093 = vmatpush1.bf16.msra.mxu0 %v2875_v20  ;;  %v2893_v37 = vld [vmem:[%s3929_s6 + $0xa8] ss:$12 sps:$4 sm:$0xff]   ;;  %v2899_v39 = vld [vmem:[%s3929_s6 + $0x80] ss:$12 sps:$4 sm:$0xff]   ;;  %v2900_v41 = vld [vmem:[%s3929_s6 + $0x98] ss:$12 sps:$4 sm:$0xff]  }
 0x294   : > { %1094 = vmatprep.subr.bf16.mxu0 %v2876_v21  ;;  %2619 = vmatpush3.bf16.msra.mxu1 %v2895_v27  ;;  %v4025_v38 = vld [vmem:[#allocation2] sm:$0xff]  ;;  %vm3378_vm0 = vmmov 0   ;;  %v4044_v44 = vshrl.u32 %v947_v43, 7  ;;  %vm1180_vm1 = vcmask 261120   ;;  %s3379_s10 = smov 96   ;;  %s3381_s12 = smov 32  }
 0x295   : > { %2620 = vmatprep.subr.bf16.mxu1 %v3377_v18  ;;  %v911_v40 = vpack.c.bf16 %v4025_v38, %v4025_v38  ;;  %v2901_v42 = vld [vmem:[%s3929_s6 + $0xb0] ss:$12 sps:$4 sm:$0xff]   ;;  %2632 = vmatprep.mubr.msk.bf16.mxu1 %vm3378_vm0, %v3377_v18  ;;  %v945_v46 = vld [vmem:[%s3973_s3] sm:$0x7]  ;;  %s3380_s3 = smov 64   ;;  %vm1243_vm2 = vcmask 1043456  }
 0x296   : > { %v953_v45 = vsub.s32 1, %v4044_v44  ;;  %v949_v47 = vsub.s32 0, %v4044_v44  ;;  %v957_v59 = vsub.s32 2, %v4044_v44  ;;  %s4408_s25 = scalar_lea.vmem [#allocation6], %s3904_s20  ;;  %vm1227_vm3 = vcmask 64512   ;;  %s4410_s8 = sld [smem:[#allocation49_spill]] }
 0x297   : > { %1095 = vmatpush1.bf16.msra.mxu0 %v2878_v22  ;;  %v4071_v4 = vld [vmem:[%s4408_s25] ss:$0 sm:$0xff]  ;;  %vm1633_vm4 = vcmask 523264   ;;  %vm1635_vm5 = vcmask 785408   ;;  %s4412_s17 = sld [smem:[#allocation50_spill]]  ;;  %s4417_s14 = sld [smem:[#allocation30_spill]] }
 0x298   : > { %1096 = vmatprep.subr.bf16.mxu0 %v2879_v23  ;;  %2621 = vmatpush3.bf16.msra.mxu1 %v2896_v31  ;;  %v954_v48 = vrot.slane %v945_v46, %v953_v45  ;;  %v950_v49 = vrot.slane %v945_v46, %v949_v47  ;;  %v958_v60 = vrot.slane %v945_v46, %v957_v59 }
 0x299   : > { %2622 = vmatprep.subr.bf16.mxu1 %v3377_v18 }
 0x29b   : > { %1097 = vmatpush1.bf16.msra.mxu0 %v2881_v24 }
 0x29c   : > { %1098 = vmatprep.subr.bf16.mxu0 %v2882_v26  ;;  %2623 = vmatpush3.bf16.msra.mxu1 %v2897_v33 }
 0x29d   : > { %2624 = vmatprep.subr.bf16.mxu1 %v3377_v18  ;;  %s4413_s11 = scalar_lea.vmem %s4412_s17, %s3955_s21  ;;  %p2552_p5 = scmp.ne.s32.totalorder %s4417_s14, 1 }
 0x29f   : > { %1099 = vmatpush1.bf16.msra.mxu0 %v2884_v28 }
 0x2a0   : > { %1100 = vmatprep.subr.bf16.mxu0 %v2885_v29  ;;  %2625 = vmatpush3.bf16.msra.mxu1 %v2898_v36 }
 0x2a1   : > { %2626 = vmatprep.subr.bf16.mxu1 %v3377_v18 }
 0x2a3   : > { %1101 = vmatpush1.bf16.msra.mxu0 %v2887_v30 }
 0x2a4   : > { %1102 = vmatprep.subr.bf16.mxu0 %v2888_v32  ;;  %2627 = vmatpush3.bf16.msra.mxu1 %v2899_v39 }
 0x2a5   : > { %2628 = vmatprep.subr.bf16.mxu1 %v3377_v18 }
 0x2a7   : > { %1103 = vmatpush1.bf16.msra.mxu0 %v2890_v34 }
 0x2a8   : > { %1104 = vmatprep.subr.bf16.mxu0 %v2891_v35  ;;  %2629 = vmatpush3.bf16.msra.mxu1 %v2900_v41 }
 0x2a9   : > { %2630 = vmatprep.subr.bf16.mxu1 %v3377_v18 }
 0x2ab   : > { %1105 = vmatpush1.bf16.msra.mxu0 %v2893_v37 }
 0x2ac   : > { %2660 = vmatprep.subr.bf16.mxu0 %v3377_v18  ;;  %2631 = vmatpush3.bf16.msra.mxu1 %v2901_v42 }
 0x2ad   : > { %2636 = vmatprep.subr.bf16.mxu1 %v3377_v18 }
 0x2ae   : > { %1123 = vmatmul.mubr.bf16.vlgmr.msra.gmra.mrb[0].mxu0 %v911_v40 }
 0x2af   : > { %2662 = vmatprep.mubr.msk.bf16.mxu0 %vm3378_vm0, %v3377_v18  ;;  %2633 = vmatmul.mubr.bf16.vlgmr.msra.gmra.mrb[0].mxu1 %v911_v40 }
 0x2b0   : > { %2638 = vmatprep.mubr.msk.bf16.mxu1 %vm3378_vm0, %v3377_v18 }
 0x381   : > { %v1124_v50 = vpop.f32.mrb[0].mxu0 }
 0x382   : > { %v1126_v51 = vpop.f32.mrb[1].mxu0  ;;  %v1125_v55 = vadd.f32 %v1124_v50, %v950_v49  ;;  %v1165_v61 = vpop.f32.mrb[0].mxu1 }
 0x383   : > { %v1127_v52 = vadd.f32 %v1126_v51, %v954_v48  ;;  %v1128_v53 = vpop.f32.mrb[2].mxu0  ;;  %v1166_v62 = vadd.f32 %v1165_v61, %v958_v60  ;;  %v2634_v63 = vpop.f32.mrb[1].mxu1 }
 0x384   : > { %v1129_v54 = vpop.f32.mrb[3].mxu0  ;;  %v1171_v58 = vpack.c.bf16 %v1125_v55, %v1125_v55  ;;  %v1168_v0 = vpop.f32.mrb[2].mxu1 }
 0x385   : > { %v1172_v56 = vpack.c.bf16 %v1127_v52, %v1127_v52  ;;  %v4064_v1 = vpack.c.bf16 %v1166_v62, %v1166_v62  ;;  %v2635_v2 = vpop.f32.mrb[3].mxu1 }
 0x387   : > { %1291 = vrot.lane.b32.xlu1 %v1172_v56, %s3379_s10  ;;  %v1185_v57 = vsel %vm1180_vm1, %v1172_v56, 0  ;;  %v1245_v3 = vsel %vm1243_vm2, %v4064_v1, 0 }
 0x388   : > { %2637 = vmatpush3.bf16.xpose.msra.mxu1 %v1185_v57 }
 0x389   : > { %2642 = vmatprep.subr.bf16.mxu1 %v3377_v18 }
 0x38b   : > { %1288 = vrot.lane.b32.xlu1 %v1171_v58, %s3379_s10 }
 0x38f   : > { %1400 = vrot.lane.b32.xlu1 %v1171_v58, %s3380_s3  ;;  %2639 = vmatmul.mubr.msk.bf16.vlgmr.msra.gmra.mrb[4].mxu1 %vm1180_vm1, %v1171_v58 }
 0x390   : > { %2644 = vmatprep.mubr.msk.bf16.mxu1 %vm3378_vm0, %v3377_v18  ;;  %2643 = vmatpush3.bf16.msra.mxu1 %v1245_v3 }
 0x391   : > { %2648 = vmatprep.subr.bf16.mxu1 %v3377_v18 }
 0x393   : > { %1512 = vrot.lane.b32.xlu1 %v1172_v56, %s3381_s12 }
 0x397   : > { %1510 = vrot.lane.b32.xlu1 %v1171_v58, %s3381_s12 }
 0x3f9   : > { %v1292_v16 = vpop.permute.xlu1 %1291 }
 0x3fa   : > { %v1297_v29 = vsel %vm1180_vm1, %v1292_v16, 0 }
 0x3fd   : > { %v1289_v19 = vpop.permute.xlu1 %1288 }
 0x401   : > { %v1401_v21 = vpop.permute.xlu1 %1400 }
 0x405   : > { %v1513_v24 = vpop.permute.xlu1 %1512 }
 0x406   : > { %v1518_v27 = vsel %vm1180_vm1, %v1513_v24, 0 }
 0x409   : > { %v1511_v30 = vpop.permute.xlu1 %1510 }
 0x462   : > { %v1221_v5 = vpop.f32.mrb[4].mxu1 }
 0x463   : > { %v1222_v6 = vadd.f32 %v4071_v4, %v1221_v5  ;;  %v2640_v7 = vpop.f32.mrb[5].mxu1 }
 0x464   : > { %v1224_v8 = vpop.f32.mrb[6].mxu1 }
 0x465   : > { %v2641_v9 = vpop.f32.mrb[7].mxu1  ;;  %v1228_v10 = vsel %vm1227_vm3, %v1222_v6, -inf }
 0x466   : > { %1229 = vmax.xlane.f32.xlu0 %v1228_v10 }
 0x4f3   : > { %v1230_v11 = vpop.xlane.xlu0 %1229 }
 0x4f4   : > { %v1231_v12 = vsub.f32 %v1222_v6, %v1230_v11 }
 0x4f6   : > { %v1232_v13 = vmul.f32 1.442695, %v1231_v12 }
 0x4f8   : > { %2950 = vpow2.f32 %v1232_v13 }
 0x502   : > { %v2951_v14 = vpop.eup %2950 }
 0x503   : > { %v1234_v15 = vsel %vm1227_vm3, %v2951_v14, 0.0 }
 0x504   : > { %1235 = vadd.xlane.f32.xlu0 %v1234_v15 }
 0x51a   : > { %1402 = vrot.lane.b32.xlu0 %v1172_v56, %s3380_s3 }
 0x591   : > { %v1236_v20 = vpop.xlane.xlu0 %1235 }
 0x592   : > { %2952 = vrcp.f32 %v1236_v20 }
 0x595   : > { %v1403_v22 = vpop.permute.xlu0 %1402 }
 0x596   : > { %v1408_v23 = vsel %vm1180_vm1, %v1403_v22, 0 }
 0x597   : > { %2661 = vmatpush3.bf16.xpose.msra.mxu0 %v1408_v23 }
 0x598   : > { %2672 = vmatprep.subr.bf16.mxu0 %v3377_v18 }
 0x59c   : > { %v2953_v25 = vpop.eup %2952 }
 0x59d   : > { %v1238_v26 = vmul.f32 %v2953_v25, %v2951_v14 }
 0x59e   : > { %2663 = vmatmul.mubr.msk.bf16.vlgmr.msra.gmra.mrb[4].mxu0 %vm1180_vm1, %v1401_v21 }
 0x59f   : > { %2673 = vmatpush3.bf16.xpose.msra.mxu0 %v1518_v27  ;;  %v1239_v28 = vpack.c.bf16 %v1238_v26, %v1238_v26  ;;  %2674 = vmatprep.mubr.msk.bf16.mxu0 %vm3378_vm0, %v3377_v18 }
 0x5a0   : > { %2684 = vmatprep.subr.bf16.mxu0 %v3377_v18 }
 0x5a1   : > { %2645 = vmatmul.mubr.msk.bf16.vlgmr.msra.gmra.mrb[8].mxu1 %vm1227_vm3, %v1239_v28  ;;  %v2902_v28 = vld [vmem:[%s3935_s23] sm:$0xff]  }
 0x5a2   : > { %2649 = vmatpush3.bf16.xpose.msra.mxu1 %v1297_v29  ;;  %2650 = vmatprep.mubr.msk.bf16.mxu1 %vm3378_vm0, %v3377_v18  ;;  %v2903_v29 = vld [vmem:[%s3935_s23 + $0x8] sm:$0xff]  }
 0x5a3   : > { %2654 = vmatprep.subr.bf16.mxu1 %v3377_v18 }
 0x5a6   : > { %2675 = vmatmul.mubr.msk.bf16.vlgmr.msra.gmra.mrb[8].mxu0 %vm1180_vm1, %v1511_v30  ;;  %v2904_v30 = vld [vmem:[%s3935_s23 + $0x10] sm:$0xff]  }
 0x5a7   : > { %2700 = vmatprep.mubr.msk.bf16.mxu0 %vm3378_vm0, %v3377_v18  ;;  %2685 = vmatpush3.bf16.msra.mxu0 %v2902_v28 }
 0x5a8   : > { %2686 = vmatprep.subr.bf16.mxu0 %v3377_v18 }
 0x5a9   : > { %2651 = vmatmul.mubr.msk.bf16.vlgmr.msra.gmra.mrb[12].mxu1 %vm1180_vm1, %v1289_v19 }
 0x5aa   : > { %2656 = vmatprep.mubr.msk.bf16.mxu1 %vm3378_vm0, %v3377_v18 }
 0x5ab   : > { %2687 = vmatpush3.bf16.msra.mxu0 %v2903_v29 }
 0x5ac   : > { %2688 = vmatprep.subr.bf16.mxu0 %v3377_v18 }
 0x5af   : > { %2689 = vmatpush3.bf16.msra.mxu0 %v2904_v30 }
 0x5b0   : > { %2690 = vmatprep.subr.bf16.mxu0 %v3377_v18 }
 0x671   : > { %v1444_v31 = vpop.f32.mrb[4].mxu0 }
 0x672   : > { %v1445_v32 = vadd.f32 %v4071_v4, %v1444_v31  ;;  %v2664_v33 = vpop.f32.mrb[5].mxu0  ;;  %v2905_v31 = vld [vmem:[%s3935_s23 + $0x18] sm:$0xff]  }
 0x673   : > { %v1447_v34 = vpop.f32.mrb[6].mxu0  ;;  %2691 = vmatpush3.bf16.msra.mxu0 %v2905_v31  ;;  %v2908_v33 = vld [vmem:[%s3935_s23 + $0x30] sm:$0xff]   ;;  %v2516_v31 = vld [vmem:[%s4413_s11] ss:$0 sm:$0xff] }
 0x674   : > { %v4096_v35 = vpop.f32.mrb[8].mxu1  ;;  %v2665_v36 = vpop.f32.mrb[7].mxu0  ;;  %v1450_v37 = vsel %vm1227_vm3, %v1445_v32, -inf  ;;  %2692 = vmatprep.subr.bf16.mxu0 %v3377_v18 }
 0x675   : > { %1451 = vmax.xlane.f32.xlu0 %v1450_v37  ;;  %v2646_v39 = vpop.f32.mrb[9].mxu1 }
 0x676   : > { %v1284_v40 = vpop.f32.mrb[10].mxu1 }
 0x677   : > { %v2647_v41 = vpop.f32.mrb[11].mxu1  ;;  %v2909_v40 = vld [vmem:[%s3935_s23 + $0x38] sm:$0xff]  }
 0x679   : > { %v1554_v42 = vpop.f32.mrb[8].mxu0 }
 0x67a   : > { %v2676_v43 = vpop.f32.mrb[9].mxu0  ;;  %v1555_v53 = vadd.f32 %v4071_v4, %v1554_v42 }
 0x67b   : > { %v1557_v46 = vpop.f32.mrb[10].mxu0 }
 0x67c   : > { %v1333_v48 = vpop.f32.mrb[12].mxu1  ;;  %v2677_v49 = vpop.f32.mrb[11].mxu0  ;;  %v1560_v56 = vsel %vm1227_vm3, %v1555_v53, -inf }
 0x67d   : > { %v1334_v50 = vadd.f32 %v4071_v4, %v1333_v48  ;;  %v2652_v51 = vpop.f32.mrb[13].mxu1 }
 0x67e   : > { %v1336_v52 = vpop.f32.mrb[14].mxu1 }
 0x67f   : > { %v2653_v54 = vpop.f32.mrb[15].mxu1  ;;  %v1339_v55 = vsel %vm1227_vm3, %v1334_v50, -inf }
 0x680   : > { %1340 = vmax.xlane.f32.xlu1 %v1339_v55 }
 0x684   : > { %1561 = vmax.xlane.f32.xlu1 %v1560_v56 }
 0x702   : > { %v1452_v57 = vpop.xlane.xlu0 %1451 }
 0x703   : > { %v1453_v58 = vsub.f32 %v1445_v32, %v1452_v57  ;;  %v2906_v32 = vld [vmem:[%s3935_s23 + $0x20] sm:$0xff]  }
 0x704   : > { %2693 = vmatpush3.bf16.msra.mxu0 %v2906_v32 }
 0x705   : > { %v1454_v59 = vmul.f32 1.442695, %v1453_v58  ;;  %2694 = vmatprep.subr.bf16.mxu0 %v3377_v18  ;;  %v2506_v58 = vld [vmem:[%s854_s1] ss:$0 sm:$0xff]  ;;  %s4411_s1 = scalar_lea.vmem %s4410_s8, %s3955_s21 }
 0x706   : > { %v2515_v29 = vld [vmem:[%s4411_s1] ss:$0 sm:$0xff] }
 0x707   : > { %2954 = vpow2.f32 %v1454_v59 }
 0x70d   : > { %v1341_v60 = vpop.xlane.xlu1 %1340 }
 0x70e   : > { %v1342_v61 = vsub.f32 %v1334_v50, %v1341_v60 }
 0x710   : > { %v1343_v3 = vmul.f32 1.442695, %v1342_v61 }
 0x711   : > { %v2955_v62 = vpop.eup %2954  ;;  %v1562_v63 = vpop.xlane.xlu1 %1561 }
 0x712   : > { %v1563_v0 = vsub.f32 %v1555_v53, %v1562_v63  ;;  %v1456_v2 = vsel %vm1227_vm3, %v2955_v62, 0.0 }
 0x713   : > { %1457 = vadd.xlane.f32.xlu0 %v1456_v2  ;;  %v2912_v2 = vld [vmem:[%s3941_s26 + $0x4] ss:$8 sps:$4 sm:$0xff]  }
 0x714   : > { %v1564_v4 = vmul.f32 1.442695, %v1563_v0  ;;  %v2910_v0 = vld [vmem:[%s3941_s26] ss:$8 sps:$4 sm:$0xff]  }
 0x716   : > { %2956 = vpow2.f32 %v1564_v4  ;;  %v2913_v4 = vld [vmem:[%s3941_s26 + $0x10] ss:$8 sps:$4 sm:$0xff]  }
 0x717   : > { %2958 = vpow2.f32 %v1343_v3  ;;  %v2915_v3 = vld [vmem:[%s3941_s26 + $0x14] ss:$8 sps:$4 sm:$0xff]  }
 0x720   : > { %v2957_v5 = vpop.eup %2956 }
 0x721   : > { %v1566_v6 = vsel %vm1227_vm3, %v2957_v5, 0.0  ;;  %v2959_v7 = vpop.eup %2958 }
 0x722   : > { %1567 = vadd.xlane.f32.xlu1 %v1566_v6  ;;  %v1345_v8 = vsel %vm1227_vm3, %v2959_v7, 0.0  ;;  %v2916_v6 = vld [vmem:[%s3941_s26 + $0x20] ss:$8 sps:$4 sm:$0xff]  }
 0x726   : > { %1346 = vadd.xlane.f32.xlu1 %v1345_v8 }
 0x729   : > { %1352 = vrot.lane.b32.xlu0 %v4064_v1, %s3379_s10 }
 0x737   : > { %1462 = vrot.lane.b32.xlu1 %v4064_v1, %s3380_s3 }
 0x73b   : > { %1572 = vrot.lane.b32.xlu1 %v4064_v1, %s3381_s12 }
 0x7a0   : > { %v1458_v9 = vpop.xlane.xlu0 %1457 }
 0x7a4   : > { %v1353_v10 = vpop.permute.xlu0 %1352 }
 0x7a5   : > { %v1358_v11 = vsel %vm1243_vm2, %v1353_v10, 0  ;;  %v2921_v10 = vld [vmem:[%s3941_s26 + $0x34] ss:$8 sps:$4 sm:$0xff]  }
 0x7a6   : > { %2655 = vmatpush3.bf16.msra.mxu1 %v1358_v11  ;;  %v2919_v11 = vld [vmem:[%s3941_s26 + $0x30] ss:$8 sps:$4 sm:$0xff]  }
 0x7a7   : > { %2666 = vmatprep.subr.bf16.mxu1 %v3377_v18 }
 0x7af   : > { %v1568_v12 = vpop.xlane.xlu1 %1567 }
 0x7b3   : > { %v1347_v13 = vpop.xlane.xlu1 %1346 }
 0x7b4   : > { %2960 = vrcp.f32 %v1347_v13  ;;  %v2922_v13 = vld [vmem:[%s3941_s26 + $0x40] ss:$8 sps:$4 sm:$0xff]  }
 0x7b5   : > { %2962 = vrcp.f32 %v1458_v9 }
 0x7b6   : > { %2964 = vrcp.f32 %v1568_v12  ;;  %v2924_v12 = vld [vmem:[%s3941_s26 + $0x44] ss:$8 sps:$4 sm:$0xff]  }
 0x7b7   : > { %v1463_v16 = vpop.permute.xlu1 %1462 }
 0x7b8   : > { %v1468_v21 = vsel %vm1243_vm2, %v1463_v16, 0  ;;  %v2930_v16 = vld [vmem:[%s3941_s26 + $0x64] ss:$8 sps:$4 sm:$0xff]  }
 0x7bb   : > { %v1573_v22 = vpop.permute.xlu1 %1572 }
 0x7bc   : > { %v1578_v25 = vsel %vm1243_vm2, %v1573_v22, 0  ;;  %v2935_v22 = vld [vmem:[%s3947_s9] sm:$0xff]  }
 0x7be   : > { %v2961_v14 = vpop.eup %2960 }
 0x7bf   : > { %v1349_v15 = vmul.f32 %v2961_v14, %v2959_v7  ;;  %v2963_v20 = vpop.eup %2962  ;;  %v2927_v14 = vld [vmem:[%s3941_s26 + $0x54] ss:$8 sps:$4 sm:$0xff]  }
 0x7c0   : > { %v1460_v1 = vmul.f32 %v2963_v20, %v2955_v62  ;;  %v2965_v24 = vpop.eup %2964  ;;  %v2933_v20 = vld [vmem:[%s3941_s26 + $0x74] ss:$8 sps:$4 sm:$0xff]  }
 0x7c1   : > { %v1350_v19 = vpack.c.bf16 %v1349_v15, %v1349_v15  ;;  %v1570_v26 = vmul.f32 %v2965_v24, %v2957_v5  ;;  %v2918_v5 = vld [vmem:[%s3941_s26 + $0x24] ss:$8 sps:$4 sm:$0xff]   ;;  %v2925_v15 = vld [vmem:[%s3941_s26 + $0x50] ss:$8 sps:$4 sm:$0xff]  }
 0x7c2   : > { %v1461_v23 = vpack.c.bf16 %v1460_v1, %v1460_v1  ;;  %v2934_v1 = vld [vmem:[%s3947_s9 + $0x40] sm:$0xff]   ;;  %v2937_v24 = vld [vmem:[%s3947_s9 + $0x8] sm:$0xff]  }
 0x7c3   : > { %2657 = vmatmul.mubr.msk.bf16.vlgmr.msra.gmra.mrb[16].mxu1 %vm1227_vm3, %v1350_v19  ;;  %v1571_v27 = vpack.c.bf16 %v1570_v26, %v1570_v26  ;;  %v2928_v19 = vld [vmem:[%s3941_s26 + $0x60] ss:$8 sps:$4 sm:$0xff]  }
 0x7c4   : > { %2667 = vmatpush3.bf16.msra.mxu1 %v1468_v21  ;;  %2668 = vmatprep.mubr.msk.bf16.mxu1 %vm3378_vm0, %v3377_v18  ;;  %v2931_v21 = vld [vmem:[%s3941_s26 + $0x70] ss:$8 sps:$4 sm:$0xff]  }
 0x7c5   : > { %2678 = vmatprep.subr.bf16.mxu1 %v3377_v18 }
 0x7cb   : > { %2669 = vmatmul.mubr.msk.bf16.vlgmr.msra.gmra.mrb[20].mxu1 %vm1227_vm3, %v1461_v23  ;;  %v2936_v23 = vld [vmem:[%s3947_s9 + $0x48] sm:$0xff]  }
 0x7cc   : > { %2679 = vmatpush3.bf16.msra.mxu1 %v1578_v25  ;;  %2680 = vmatprep.mubr.msk.bf16.mxu1 %vm3378_vm0, %v3377_v18 }
 0x7cd   : > { %1887 = vmatprep.subr.bf16.mxu1 %v2912_v2 }
 0x7d3   : > { %2681 = vmatmul.mubr.msk.bf16.vlgmr.msra.gmra.mrb[24].mxu1 %vm1227_vm3, %v1571_v27 }
 0x7d4   : > { %1919 = vmatprep.mubr.bf16.mxu1 %v3376_v17  ;;  %v2907_v17 = vld [vmem:[%s3935_s23 + $0x28] sm:$0xff]   ;;  %1888 = vmatpush1.bf16.msra.mxu1 %v2910_v0 }
 0x7d5   : > { %2695 = vmatpush3.bf16.msra.mxu0 %v2907_v17  ;;  %1889 = vmatprep.subr.bf16.mxu1 %v2915_v3 }
 0x7d6   : > { %2696 = vmatprep.subr.bf16.mxu0 %v3377_v18 }
 0x7d8   : > { %1890 = vmatpush1.bf16.msra.mxu1 %v2913_v4 }
 0x7d9   : > { %2697 = vmatpush3.bf16.msra.mxu0 %v2908_v33  ;;  %1891 = vmatprep.subr.bf16.mxu1 %v2918_v5  ;;  %v2533_v5 = vld [vmem:[%s867_s18] ss:$0 sm:$0xff] }
 0x7da   : > { %2698 = vmatprep.subr.bf16.mxu0 %v3377_v18 }
 0x7dc   : > { %1892 = vmatpush1.bf16.msra.mxu1 %v2916_v6 }
 0x7dd   : > { %2699 = vmatpush3.bf16.msra.mxu0 %v2909_v40  ;;  %1893 = vmatprep.subr.bf16.mxu1 %v2921_v10  ;;  %v2942_v40 = vld [vmem:[%s3947_s9 + $0x60] sm:$0xff]  }
 0x7de   : > { %2594 = vmatprep.subr.bf16.mxu0 %v2934_v1 }
 0x7e0   : > { %1894 = vmatpush1.bf16.msra.mxu1 %v2919_v11 }
 0x7e1   : > { %1895 = vmatprep.subr.bf16.mxu1 %v2924_v12 }
 0x7e4   : > { %1896 = vmatpush1.bf16.msra.mxu1 %v2922_v13 }
 0x7e5   : > { %1897 = vmatprep.subr.bf16.mxu1 %v2927_v14 }
 0x7e8   : > { %1898 = vmatpush1.bf16.msra.mxu1 %v2925_v15 }
 0x7e9   : > { %1899 = vmatprep.subr.bf16.mxu1 %v2930_v16 }
 0x7ec   : > { %1900 = vmatpush1.bf16.msra.mxu1 %v2928_v19 }
 0x7ed   : > { %1901 = vmatprep.subr.bf16.mxu1 %v2933_v20 }
 0x7f0   : > { %1902 = vmatpush1.bf16.msra.mxu1 %v2931_v21  ;;  %v2550_v21 = vld [vmem:[%s870_s30] ss:$0 sm:$0xff] }
 0x896   : > { %v1394_v34 = vpop.f32.mrb[16].mxu1 }
 0x897   : > { %1621 = vrot.lane.b32.xlu0 %v1394_v34, %s3381_s12  ;;  %v2658_v36 = vpop.f32.mrb[17].mxu1  ;;  %v2938_v34 = vld [vmem:[%s3947_s9 + $0x50] sm:$0xff]  }
 0x898   : > { %v1397_v37 = vpop.f32.mrb[18].mxu1  ;;  %v2939_v36 = vld [vmem:[%s3947_s9 + $0x10] sm:$0xff]  }
 0x899   : > { %v2659_v39 = vpop.f32.mrb[19].mxu1  ;;  %v2940_v37 = vld [vmem:[%s3947_s9 + $0x58] sm:$0xff]  }
 0x89a   : > { %v2941_v39 = vld [vmem:[%s3947_s9 + $0x18] sm:$0xff]  }
 0x89e   : > { %v1504_v41 = vpop.f32.mrb[20].mxu1 }
 0x89f   : > { %1625 = vrot.lane.b32.xlu1 %v1504_v41, %s3380_s3  ;;  %v2670_v42 = vpop.f32.mrb[21].mxu1  ;;  %v2943_v41 = vld [vmem:[%s3947_s9 + $0x20] sm:$0xff]  }
 0x8a0   : > { %v1507_v43 = vpop.f32.mrb[22].mxu1  ;;  %v2944_v42 = vld [vmem:[%s3947_s9 + $0x68] sm:$0xff]  }
 0x8a1   : > { %v2671_v46 = vpop.f32.mrb[23].mxu1  ;;  %v2945_v43 = vld [vmem:[%s3947_s9 + $0x28] sm:$0xff]  }
 0x8a2   : > { %v2946_v46 = vld [vmem:[%s3947_s9 + $0x70] sm:$0xff]  }
 0x8a6   : > { %v1614_v48 = vpop.f32.mrb[24].mxu1 }
 0x8a7   : > { %1629 = vrot.lane.b32.xlu0 %v1614_v48, %s3379_s10  ;;  %v2682_v49 = vpop.f32.mrb[25].mxu1  ;;  %v2947_v48 = vld [vmem:[%s3947_s9 + $0x30] sm:$0xff]  }
 0x8a8   : > { %v1617_v50 = vpop.f32.mrb[26].mxu1  ;;  %v2948_v49 = vld [vmem:[%s3947_s9 + $0x78] sm:$0xff]  }
 0x8a9   : > { %v2683_v51 = vpop.f32.mrb[27].mxu1  ;;  %v2949_v50 = vld [vmem:[%s3947_s9 + $0x38] sm:$0xff]  }
 0x8aa   : > { %v1795_v51 = vld [vmem:[%s3979_s22] sm:$0x3] }
 0x909   : > { %v1622_v52 = vpop.permute.xlu0 %1621 }
 0x90a   : > { %v1632_v18 = vsel %vm1180_vm1, %v4096_v35, %v1622_v52  ;;  %v1800_v52 = vrot.slane %v1795_v51, %v949_v47 }
 0x911   : > { %v1626_v53 = vpop.permute.xlu1 %1625 }
 0x912   : > { %v1634_v54 = vsel %vm1633_vm4, %v1632_v18, %v1626_v53  ;;  %v1804_v53 = vrot.slane %v1795_v51, %v953_v45 }
 0x919   : > { %v1630_v55 = vpop.permute.xlu0 %1629 }
 0x91a   : > { %v1636_v56 = vsel %vm1635_vm5, %v1634_v54, %v1630_v55 }
 0x91b   : > { %v1637_v57 = vpack.c.bf16 %v1636_v56, %v1636_v56 }
 0x91d   : > { %2701 = vmatmul.mubr.bf16.vlgmr.msra.gmra.mrb[12].mxu0 %v1637_v57 }
 0x91e   : > { %2595 = vmatpush3.bf16.msra.mxu0 %v2935_v22  ;;  %v2551_v22 = vld [vmem:[%s873_s2] ss:$0 sm:$0xff] }
 0x91f   : > { %2596 = vmatprep.subr.bf16.mxu0 %v2936_v23 }
 0x922   : > { %2597 = vmatpush3.bf16.msra.mxu0 %v2937_v24 }
 0x923   : > { %2598 = vmatprep.subr.bf16.mxu0 %v2938_v34 }
 0x926   : > { %2599 = vmatpush3.bf16.msra.mxu0 %v2939_v36 }
 0x927   : > { %2600 = vmatprep.subr.bf16.mxu0 %v2940_v37 }
 0x92a   : > { %2601 = vmatpush3.bf16.msra.mxu0 %v2941_v39 }
 0x92b   : > { %2602 = vmatprep.subr.bf16.mxu0 %v2942_v40 }
 0x92e   : > { %2603 = vmatpush3.bf16.msra.mxu0 %v2943_v41 }
 0x92f   : > { %2604 = vmatprep.subr.bf16.mxu0 %v2944_v42 }
 0x932   : > { %2605 = vmatpush3.bf16.msra.mxu0 %v2945_v43 }
 0x933   : > { %2606 = vmatprep.subr.bf16.mxu0 %v2946_v46 }
 0x936   : > { %2607 = vmatpush3.bf16.msra.mxu0 %v2947_v48 }
 0x937   : > { %2608 = vmatprep.subr.bf16.mxu0 %v2948_v49 }
 0x93a   : > { %2609 = vmatpush3.bf16.msra.mxu0 %v2949_v50 }
 0x9f0   : > { %v1743_v59 = vpop.f32.mrb[12].mxu0 }
 0x9f1   : > { %v1744_v60 = vadd.f32 %v2506_v58, %v1743_v59  ;;  %v2702_v61 = vpop.f32.mrb[13].mxu0 }
 0x9f2   : > { %v1746_v62 = vpop.f32.mrb[14].mxu0 }
 0x9f3   : > { %v2703_v63 = vpop.f32.mrb[15].mxu0  ;;  %v1749_v35 = vadd.f32 %v1744_v60, %v4025_v38 }
 0x9f5   : > { %1752 = vadd.xlane.f32.xlu1 %v1749_v35 }
 0xa82   : > { %v1753_v38 = vpop.xlane.xlu1 %1752 }
 0xa83   : > { %v1755_v7 = vmul.f32 0.0078125, %v1753_v38 }
 0xa85   : > { %v1756_v8 = vsub.f32 %v1749_v35, %v1755_v7 }
 0xa87   : > { %v1757_v9 = vmul.f32 %v1756_v8, %v1756_v8 }
 0xa89   : > { %1758 = vadd.xlane.f32.xlu0 %v1757_v9 }
 0xb16   : > { %v1759_v25 = vpop.xlane.xlu0 %1758 }
 0xb17   : > { %v1760_v26 = vmul.f32 0.0078125, %v1759_v25 }
 0xb19   : > { %v1761_v27 = vadd.f32 1e-05, %v1760_v26 }
 0xb1b   : > { %2966 = vrsqrt.f32 %v1761_v27 }
 0xb25   : > { %v2967_v28 = vpop.eup %2966 }
 0xb26   : > { %v1763_v30 = vmul.f32 %v2967_v28, %v1756_v8 }
 0xb28   : > { %v1770_v32 = vmul.f32 %v2515_v29, %v1763_v30 }
 0xb2a   : > { %v1777_v17 = vadd.f32 %v2516_v31, %v1770_v32 }
 0xb2c   : > { %v1778_v33 = vpack.c.bf16 %v1777_v17, %v1777_v17 }
 0xb2e   : > { %1920 = vmatmul.mubr.bf16.vlgmr.msra.gmra.mrb[28].mxu1 %v1778_v33 }
 0xc01   : > { %v1921_v18 = vpop.f32.mrb[28].mxu1 }
 0xc02   : > { %v1922_v54 = vadd.f32 %v1921_v18, %v1800_v52  ;;  %v1923_v55 = vpop.f32.mrb[29].mxu1 }
 0xc03   : > { %v1924_v56 = vadd.f32 %v1923_v55, %v1804_v53  ;;  %v1925_v57 = vpop.f32.mrb[30].mxu1 }
 0xc04   : > { %v1930_v58 = vmul.f32 0.70710677, %v1922_v54  ;;  %v1926_v59 = vpop.f32.mrb[31].mxu1  ;;  %v1928_v63 = vmul.f32 0.5, %v1922_v54 }
 0xc05   : > { %v1931_v60 = vmul.f32 0.70710677, %v1924_v56  ;;  %v1929_v0 = vmul.f32 0.5, %v1924_v56 }
 0xc06   : > { %2968 = verf.f32 %v1930_v58 }
 0xc07   : > { %2970 = verf.f32 %v1931_v60 }
 0xc10   : > { %v2969_v61 = vpop.eup %2968 }
 0xc11   : > { %v2971_v62 = vpop.eup %2970  ;;  %v1934_v35 = vadd.f32 1.0, %v2969_v61 }
 0xc12   : > { %v1935_v47 = vadd.f32 1.0, %v2971_v62 }
 0xc13   : > { %v1936_v2 = vmul.f32 %v1934_v35, %v1928_v63 }
 0xc14   : > { %v1937_v44 = vmul.f32 %v1935_v47, %v1929_v0 }
 0xc15   : > { %v1938_v3 = vpack.c.bf16 %v1936_v2, %v1936_v2 }
 0xc16   : > { %v1939_v45 = vpack.c.bf16 %v1937_v44, %v1937_v44 }
 0xc18   : > { %2107 = vmatprep.mubr.bf16.mxu0 %v1939_v45 }
 0xc19   : > { %2108 = vmatmul.mubr.bf16.vlgmr.msra.gmra.mrb[16].mxu0 %v1938_v3 }
 0xcec   : > { %v2610_v4 = vpop.f32.mrb[16].mxu0 }
 0xced   : > { %v2611_v6 = vpop.f32.mrb[17].mxu0 }
 0xcee   : > { %v2612_v38 = vadd.f32 %v2611_v6, %v2610_v4  ;;  %v2613_v7 = vpop.f32.mrb[18].mxu0 }
 0xcef   : > { %v2614_v8 = vpop.f32.mrb[19].mxu0 }
 0xcf0   : > { %v2110_v9 = vadd.f32 %v2612_v38, %v2533_v5 }
 0xcf2   : > { %v2115_v10 = vadd.f32 %v2110_v9, %v1777_v17 }
 0xcf4   : > { %2118 = vadd.xlane.f32.xlu0 %v2115_v10 }
 0xd81   : > { %v2119_v11 = vpop.xlane.xlu0 %2118 }
 0xd82   : > { %v2120_v12 = vmul.f32 0.0078125, %v2119_v11 }
 0xd84   : > { %v2121_v13 = vsub.f32 %v2115_v10, %v2120_v12 }
 0xd86   : > { %v2122_v14 = vmul.f32 %v2121_v13, %v2121_v13 }
 0xd88   : > { %2123 = vadd.xlane.f32.xlu1 %v2122_v14 }
 0xe15   : > { %v2124_v15 = vpop.xlane.xlu1 %2123 }
 0xe16   : > { %v2125_v16 = vmul.f32 0.0078125, %v2124_v15 }
 0xe18   : > { %v2126_v19 = vadd.f32 1e-05, %v2125_v16 }
 0xe1a   : > { %2972 = vrsqrt.f32 %v2126_v19 }
 0xe24   : > { %v2973_v20 = vpop.eup %2972 }
 0xe25   : > { %v2128_v1 = vmul.f32 %v2973_v20, %v2121_v13  ;;  %2147 = sbr.rel (%p2552_p5) target bundleno = 3630 (0xe2e), region = 124 }
 0xe27   : > { %v2135_v23 = vmul.f32 %v2550_v21, %v2128_v1 }
 0xe29   : > { %v2142_v24 = vadd.f32 %v2551_v22, %v2135_v23 }
 0xe2b   : > { %2143 = vst [vmem:[#allocation2] sm:$0xff] %v2142_v24  ;;  %v2148_v25 = vpack.c.bf16 (!%p2552_p5), %v2142_v24, %v2142_v24 }
 0xe2d   : > { %2149 = vst [vmem:[%s3995_s5] sm:$0xf] %v2148_v25 }
 0xe2e PF: > { %s4418_s10 = sld [smem:[#allocation31_spill]]  ;;  %s4419_s30 = sld [smem:[#allocation37_spill]] }
 0xe2f   : > { %s4420_s29 = sld [smem:[#allocation57_spill]]  ;;  %s2164_s2 = sshll.u32 %s3995_s5, 4  ;;  %s2165_s2 = int_to_ptr.vmem [resolvable:$true] %s2164_s2 }
 0xe30   : > { %s2151_s6 = scalar_lea.sflag [#allocation5], %s3904_s20  ;;  %s3210_s23 = scalar_lea.vmem %s2165_s2, 64 }
 0xe31   : > { %p3211_p6 = scmp.ne.s32.totalorder %s2165_s2, %s3210_s23  ;;  %s3382_s26 = smov [#allocation15]  }
 0xe32   : > { %s3214_s8 = sshll.u32 %s3382_s26, 4  ;;  %s3215_s8 = int_to_ptr.vmem [resolvable:$false] %s3214_s8 }
 0xe33   : > { %s3216_s1 = scalar_lea.vmem %s3215_s8, 128  ;;  %p3217_p2 = scmp.lt.s32.totalorder %s2165_s2, %s3215_s8 }
 0xe34   : > { %s2554_s3 = sshll.u32 %s4418_s10, 6  ;;  %p4422_p9 = scmp.ne.s32.totalorder %s4419_s30, 0 }
 0xe35   : > { %s4421_s4 = smov %s4420_s29  ;;  %s4219_s21 = scalar_lea.hbm %s4420_s29, %s2554_s3 }
 0xe36   : > { %p3212_p4 = pnand %p3211_p6, %p4422_p9  ;;  %p3218_p3 = scmp.lt.s32.totalorder %s3216_s1, %s3210_s23 }
 0xe38   : > { %p3213_p0 = pneg %p3212_p4  ;;  %p3219_p11 = por %p3218_p3, %p3217_p2 }
 0xe3a   : > { %p3220_p7 = pnand %p3219_p11, %p3213_p0 }
 0xe3c   : > { %3223 = shalt.err (!%p3220_p7)
}
 0xe3d   : > { %s3224_s20 = scalar_lea.hbm %s4219_s21, 64  ;;  %s3228_s13 = scalar_lea.hbm %s4421_s4, 128 }
 0xe3e   : > { %p3225_p8 = scmp.ne.s32.totalorder %s4219_s21, %s3224_s20  ;;  %p3229_p13 = scmp.lt.u32.totalorder %s4219_s21, %s4421_s4 }
 0xe3f   : > { %p3230_p12 = scmp.lt.u32.totalorder %s3228_s13, %s3224_s20  ;;  %p3232_p6 = scmp.lt.u32.totalorder %s3224_s20, %s4219_s21 }
 0xe40   : > { %p3226_p1 = pnand %p3225_p8, %p4422_p9 }
 0xe41   : > { %p3231_p5 = por %p3230_p12, %p3229_p13 }
 0xe42   : > { %p3227_p10 = pneg %p3226_p1 }
 0xe43   : > { %p3233_p4 = por %p3232_p6, %p3231_p5 }
 0xe45   : > { %p3234_p0 = pnand %p3233_p4, %p3227_p10 }
 0xe47   : > { %3237 = shalt.err (!%p3234_p0)
}
 0xe48   : > { %2728 = dma.vmem_to_hbm [thread:$0]  (%p4422_p9), %s2165_s2, 64, %s4219_s21, %s2151_s6  }
 0xe49 PF: > { %s4423_s22 = sld [smem:[#allocation27_spill]]  ;;  %s4424_s9 = sld [smem:[#allocation40_spill]] }
 0xe4a   : > { %p2765_p2 = scmp.ge.s32.totalorder %s3360_s0, 2 }
 0xe4f   : > { %s2176_s27 = sand.u32 1, %s4423_s22   ;;  %p4425_p3 = scmp.ne.s32.totalorder %s4424_s9, 0 }
 0xe50   : > { %s2177_s28 = scalar_lea.sflag [#allocation5], %s2176_s27 }
 0xe51   : > { %p2757_p11 = pnand %p2765_p2, %p4425_p3 }
 0xe53   : > { %3315 = dma.done.wait (!%p2757_p11), %s2177_s28, 64  }
 0xe54   : > { %3317 = vsyncadd (!%p2757_p11), %s2177_s28, 4294967232  ;;  %s36_s0 = sadd.s32 1, %s3360_s0   ;;  %s4426_s21 = sld [smem:[#allocation25_spill]] }
 0xe55   : > { %p33_p7 = scmp.ge.s32.totalorder %s36_s0, 6   ;;  %s4427_s22 = sld [smem:[#allocation26_spill]] }
 0xe56   : > { %s4428_s23 = sld [smem:[#allocation38_spill]]  ;;  %s4429_s24 = sld [smem:[#allocation28_spill]] }
 0xe57   : > { %s4430_s25 = sld [smem:[#allocation29_spill]]  ;;  %s4431_s26 = sld [smem:[#allocation39_spill]] }
 0xe58   : > { %s4432_s27 = sld [smem:[#allocation32_spill]]  ;;  %s4433_s28 = sld [smem:[#allocation33_spill]] }
 0xe59   : > { %s4434_s29 = sld [smem:[#allocation35_spill]]  ;;  %s4435_s30 = sld [smem:[#allocation36_spill]] }
 0xe5a   :  { %35 = sbr.rel (!%p33_p7) target bundleno = 30 (0x1e), region = 226 }
 0xe61   :  { %2182 = vsyncpa [#allocation4], 1 }
 0xe62   :  { %2184 = vsyncpa [#allocation4 + $0x1], 1 }
 0xe63   :  { %2185 = vsyncpa [#allocation7], 1 }
 0xe64   :  { %2187 = vsyncpa [#allocation7 + $0x1], 1 }
 0xe65   :  { %2188 = vsyncpa [#allocation10], 1 }
 0xe66   :  { %2189 = vsyncpa [#allocation5], 1 }
 0xe67   :  { %2191 = vsyncpa [#allocation5 + $0x1], 1 }

</bundles_post_ra>
